<compile_context>
chip_gen: v5e
topology: v5e:2x2
jax: 0.10.0
libtpu: 0.0.40
codegen_flags: <defaults>
</compile_context>

<pallas_src>
import functools
import math

import jax
import jax.numpy as jnp
import numpy as np
from jax.experimental import pallas as pl
from jax.experimental.pallas import tpu as pltpu


# ---------------------------------------------------------------------------
# In-kernel helpers (operate on (C, L) f32 values)
# ---------------------------------------------------------------------------
def _tile_channels(x, D):
    """Grouped-conv depth expansion in d-major order: out[d*C + c] = x[c].

    Pure sublane concat (vreg copies): no iota/compare/select filler and no
    MXU replication matmul.  The host permutes per-channel params to match
    this internal order.
    """
    return x if D == 1 else jnp.concatenate([x] * D, axis=0)


def _dw_conv_bn_elu(x, p, *, K, alpha):
    """Depthwise 'same' conv (K taps, BN/bias scale pre-folded) + shift + ELU.

    x: (C, L) f32.  p: (K+1, C, 1) value -- rows 0..K-1 are scaled taps,
    row K is the folded bias/BN shift.  Each p[k] is a (C, 1) sublane vector
    and broadcasts along lanes for free.
    """
    C, L = x.shape
    pad = (K - 1) // 2
    if pad > 0:
        z = jnp.zeros((C, pad), jnp.float32)
        xp = jnp.concatenate([z, x, z], axis=1)        # in-kernel 'same' padding
    else:
        xp = x
    acc = xp[:, 0:L] * p[0]
    for k in range(1, K):                              # unrolled tap mul+add
        acc = acc + xp[:, k:k + L] * p[k]
    y = acc + p[K]                                     # shift only (scale folded)
    return jnp.where(y > 0, y, alpha * (jnp.exp(y) - 1.0))   # ELU(alpha)


def _avg_pool(y, dec, *, pool):
    """AvgPool1d(pool, stride): window sums via shifted adds (VPU), then the
    stride decimation via a small 0/(1/pool) selection matmul.  Lane-strided
    slices of values are not supported by Mosaic, so the selection matmul is
    the guaranteed-to-lower path (and the MXU is otherwise idle here)."""
    C, L = y.shape
    Lw = L - pool + 1
    s = y[:, 0:Lw]
    for j in range(1, pool):
        s = s + y[:, j:j + Lw]
    return jnp.dot(s, dec, preferred_element_type=jnp.float32)


# ---------------------------------------------------------------------------
# Fused encoder kernel: one grid step = one (channel-block, batch-block) slab,
# all four stages computed with intermediates resident on-chip.
# ---------------------------------------------------------------------------
def _encoder_kernel(x_ref, p1_ref, p2_ref, p3_ref, p4_ref, d1_ref, d2_ref, o_ref,
                    *, K, D1, D2, pool, alpha, Nb):
    # Load each parameter / pool matrix exactly once per grid step and reuse
    # across the batch loop (ref reads are not CSE'd).
    p1 = p1_ref[...]
    p2 = p2_ref[...]
    p3 = p3_ref[...]
    p4 = p4_ref[...]
    d1 = d1_ref[...]
    d2 = d2_ref[...]

    for nb in range(Nb):                               # batch block (static unroll)
        x = x_ref[nb].astype(jnp.float32)              # (Cb, L)

        # blck1 (depth D1, d-major expansion) + pool1  (drop1 = identity in eval)
        x1 = _avg_pool(
            _dw_conv_bn_elu(_tile_channels(x, D1), p1, K=K, alpha=alpha),
            d1, pool=pool)                             # (F1b, Lp1)

        # blck2 + residual
        x2 = x1 + _dw_conv_bn_elu(x1, p2, K=K, alpha=alpha)

        # blck3 (depth D2) + pool2  (drop2 = identity in eval)
        x3 = _avg_pool(
            _dw_conv_bn_elu(_tile_channels(x2, D2), p3, K=K, alpha=alpha),
            d2, pool=pool)                             # (F2b, Lp2)

        # blck4 + residual
        x4 = x3 + _dw_conv_bn_elu(x3, p4, K=K, alpha=alpha)

        o_ref[nb] = x4.astype(o_ref.dtype)


# ---------------------------------------------------------------------------
# Host-side glue: param folding/permutation/packing, pool matrices, pallas_call
# ---------------------------------------------------------------------------
def make_decimation_matrix(L, pool, stride):
    """(Lw, Lp) matrix with S[t*stride, t] = 1/pool; applied to window sums."""
    Lw = L - pool + 1
    Lp = (L - pool) // stride + 1
    S = np.zeros((Lw, Lp), np.float32)
    S[np.arange(Lp) * stride, np.arange(Lp)] = 1.0 / pool
    return jnp.asarray(S)


def fold_bias_bn(bias, gamma, beta, mean, var, eps=1e-5):
    inv = gamma / jnp.sqrt(var + eps)
    scale = inv
    shift = beta - mean * inv + bias * inv
    return scale[:, None].astype(jnp.float32), shift[:, None].astype(jnp.float32)


def init_params(key, Chans, D1, D2, K):
    F1, F2 = Chans * D1, Chans * D1 * D2
    couts = [F1, F1, F2, F2]
    params = []
    for i, cout in enumerate(couts):
        ks = jax.random.split(jax.random.fold_in(key, i), 6)
        w = 0.3 * jax.random.normal(ks[0], (cout, K), jnp.float32)
        b = 0.1 * jax.random.normal(ks[1], (cout,), jnp.float32)
        gamma = 1.0 + 0.1 * jax.random.normal(ks[2], (cout,), jnp.float32)
        beta = 0.1 * jax.random.normal(ks[3], (cout,), jnp.float32)
        mean = 0.1 * jax.random.normal(ks[4], (cout,), jnp.float32)
        var = 0.5 + jnp.abs(jax.random.normal(ks[5], (cout,), jnp.float32))
        scale, shift = fold_bias_bn(b, gamma, beta, mean, var)
        params.append({"w": w, "scale": scale, "shift": shift})
    return params


def _internal_channel_order(Chans, D1, D2, channel_blocks):
    """Maps the kernel's internal (per-block d-major) channel index to the
    PyTorch (group-interleaved) channel index, for F1- and F2-sized tensors."""
    Cb = Chans // channel_blocks
    F1b = Cb * D1
    F2b = F1b * D2
    g1 = np.arange(Chans * D1)
    cb1, r1 = g1 // F1b, g1 % F1b
    d1, c1 = r1 // Cb, r1 % Cb
    i2t1 = (cb1 * Cb + c1) * D1 + d1                   # internal -> torch (F1)
    g2 = np.arange(Chans * D1 * D2)
    cb2, r2 = g2 // F2b, g2 % F2b
    d2, p1 = r2 // F1b, r2 % F1b
    i2t2 = i2t1[cb2 * F1b + p1] * D2 + d2              # internal -> torch (F2)
    return i2t1, i2t2


def _pack_stage(p, perm):
    """Fold BN/bias scale into the taps, permute to the kernel's internal
    channel order, pack tap-major as (K+1, C, 1): taps 0..K-1, shift at K."""
    w = (p["w"] * p["scale"])[perm]                    # (C, K) scaled taps
    sh = p["shift"][perm]                              # (C, 1) shift
    return jnp.concatenate([w.T, sh.T], axis=0)[:, :, None]


def conv1d_encoder_forward(x, params, *, D1=2, D2=2, K=5, pool=4, stride=2,
                           alpha=0.1, channel_blocks=1, batch_block=None,
                           out_dtype=jnp.float32):
    N, Chans, L = x.shape
    assert Chans % channel_blocks == 0
    Cb = Chans // channel_blocks
    # (8,128) BlockSpec rule: channel tiles must be sublane-aligned unless they
    # span the full channel dim.
    assert channel_blocks == 1 or Cb % 8 == 0, \
        "Chans/channel_blocks must be a multiple of 8 when channel_blocks > 1"
    assert K % 2 == 1, "'same' padding implemented for odd kernel lengths"
    if batch_block is None:
        batch_block = math.gcd(N, 8)
    assert N % batch_block == 0
    Nb = batch_block

    F1b, F2b = Cb * D1, Cb * D1 * D2
    F2 = Chans * D1 * D2
    Lp1 = (L - pool) // stride + 1
    Lp2 = (Lp1 - pool) // stride + 1

    i2t1, i2t2 = _internal_channel_order(Chans, D1, D2, channel_blocks)
    P1 = _pack_stage(params[0], i2t1)
    P2 = _pack_stage(params[1], i2t1)
    P3 = _pack_stage(params[2], i2t2)
    P4 = _pack_stage(params[3], i2t2)
    S1 = make_decimation_matrix(L, pool, stride)       # (L-pool+1, Lp1)
    S2 = make_decimation_matrix(Lp1, pool, stride)     # (Lp1-pool+1, Lp2)

    kern = functools.partial(_encoder_kernel, K=K, D1=D1, D2=D2, pool=pool,
                             alpha=alpha, Nb=Nb)
    out_internal = pl.pallas_call(
        kern,
        out_shape=jax.ShapeDtypeStruct((N, F2, Lp2), out_dtype),
        # Channel blocks outermost, batch innermost: parameter / pool-matrix
        # blocks depend only on the channel-block index, so consecutive grid
        # steps reuse them without a re-DMA.
        grid=(channel_blocks, N // Nb),
        in_specs=[
            pl.BlockSpec((Nb, Cb, L), lambda cb, nb: (nb, cb, 0)),
            pl.BlockSpec((K + 1, F1b, 1), lambda cb, nb: (0, cb, 0)),
            pl.BlockSpec((K + 1, F1b, 1), lambda cb, nb: (0, cb, 0)),
            pl.BlockSpec((K + 1, F2b, 1), lambda cb, nb: (0, cb, 0)),
            pl.BlockSpec((K + 1, F2b, 1), lambda cb, nb: (0, cb, 0)),
            pl.BlockSpec(tuple(S1.shape), lambda cb, nb: (0, 0)),
            pl.BlockSpec(tuple(S2.shape), lambda cb, nb: (0, 0)),
        ],
        out_specs=pl.BlockSpec((Nb, F2b, Lp2), lambda cb, nb: (nb, cb, 0)),
        compiler_params=pltpu.CompilerParams(
            dimension_semantics=("parallel", "parallel")),
    )(x, P1, P2, P3, P4, S1, S2)

    # Restore the PyTorch (group-interleaved) channel order from the kernel's
    # internal d-major order with one tiny gather on the final (small) output.
    return out_internal[:, np.argsort(i2t2), :]


# ---------------------------------------------------------------------------
# Pure-JAX reference (eval-mode PyTorch semantics, for the correctness check)
# ---------------------------------------------------------------------------
def _ref_block(x, w, scale, shift, K, alpha):
    pad = (K - 1) // 2
    L = x.shape[-1]
    xp = jnp.pad(x, ((0, 0), (0, 0), (pad, pad)))
    acc = sum(xp[:, :, k:k + L] * w[None, :, k:k + 1] for k in range(K))
    y = acc * scale[None] + shift[None]
    return jnp.where(y > 0, y, alpha * (jnp.exp(y) - 1.0))


def _ref_pool(x, pool, stride):
    L = x.shape[-1]
    Lp = (L - pool) // stride + 1
    return jnp.stack([x[..., t * stride:t * stride + pool].mean(-1)
                      for t in range(Lp)], axis=-1)


def reference_forward(x, params, *, D1=2, D2=2, K=5, pool=4, stride=2, alpha=0.1):
    p = params[0]
    x1 = _ref_pool(_ref_block(jnp.repeat(x, D1, axis=1), p["w"], p["scale"],
                              p["shift"], K, alpha), pool, stride)
    p = params[1]
    x2 = x1 + _ref_block(x1, p["w"], p["scale"], p["shift"], K, alpha)
    p = params[2]
    x3 = _ref_pool(_ref_block(jnp.repeat(x2, D2, axis=1), p["w"], p["scale"],
                              p["shift"], K, alpha), pool, stride)
    p = params[3]
    return x3 + _ref_block(x3, p["w"], p["scale"], p["shift"], K, alpha)


# ---------------------------------------------------------------------------
if __name__ == "__main__":
    # Small deterministic example: batch=2, Chans=16, length=32
    # (Chans chosen so the channel-block tiles are sublane-aligned: 16/2 = 8).
    N, Chans, L = 2, 16, 32
    D1, D2, K, pool, stride, alpha = 2, 2, 5, 4, 2, 0.1

    key = jax.random.PRNGKey(0)
    kx, kp = jax.random.split(key)
    x = jax.random.normal(kx, (N, Chans, L), jnp.float32)
    params = init_params(kp, Chans, D1, D2, K)

    out = conv1d_encoder_forward(x, params, D1=D1, D2=D2, K=K, pool=pool,
                                 stride=stride, alpha=alpha, channel_blocks=2)
    out = jax.block_until_ready(out)

    ref = reference_forward(x, params, D1=D1, D2=D2, K=K, pool=pool,
                            stride=stride, alpha=alpha)
    np.testing.assert_allclose(np.asarray(out), np.asarray(ref),
                               rtol=5e-4, atol=5e-5)

    # TODO(synk): Dropout1d and BatchNorm batch-statistics are training-mode
    # behaviors; this kernel implements eval/inference semantics (dropout =
    # identity, BN running stats folded into the per-channel taps/shift).
    print("KERNEL_OK")
</pallas_src>

<mosaic_0001>
module attributes {stable_mosaic.version = 11 : i64} {
  func.func @_encoder_kernel(%arg0: i32, %arg1: i32, %arg2: memref<2x8x32xf32, #tpu.memory_space<vmem>>, %arg3: memref<6x16x1xf32, #tpu.memory_space<vmem>>, %arg4: memref<6x16x1xf32, #tpu.memory_space<vmem>>, %arg5: memref<6x32x1xf32, #tpu.memory_space<vmem>>, %arg6: memref<6x32x1xf32, #tpu.memory_space<vmem>>, %arg7: memref<29x15xf32, #tpu.memory_space<vmem>>, %arg8: memref<12x6xf32, #tpu.memory_space<vmem>>, %arg9: memref<2x32x6xf32, #tpu.memory_space<vmem>>) attributes {dimension_semantics = [#tpu.dimension_semantics<parallel>, #tpu.dimension_semantics<parallel>], iteration_bounds = array<i64: 2, 1>, scalar_prefetch = 0 : i64, scratch_operands = 0 : i64, tpu.core_type = #tpu.core_type<tc>, window_params = [{transform_indices = @transform_0, window_bounds = array<i64: 2, 8, 32>}, {transform_indices = @transform_1, window_bounds = array<i64: 6, 16, 1>}, {transform_indices = @transform_2, window_bounds = array<i64: 6, 16, 1>}, {transform_indices = @transform_3, window_bounds = array<i64: 6, 32, 1>}, {transform_indices = @transform_4, window_bounds = array<i64: 6, 32, 1>}, {pipeline_mode = #tpu.pipeline_mode<synchronous>, transform_indices = @transform_5, window_bounds = array<i64: 29, 15>}, {pipeline_mode = #tpu.pipeline_mode<synchronous>, transform_indices = @transform_6, window_bounds = array<i64: 12, 6>}, {transform_indices = @transform_7, window_bounds = array<i64: 2, 32, 6>}]} {
    %c0 = arith.constant 0 : index
    %c0_0 = arith.constant 0 : index
    %c0_1 = arith.constant 0 : index
    %0 = vector.load %arg3[%c0, %c0_0, %c0_1] : memref<6x16x1xf32, #tpu.memory_space<vmem>>, vector<6x16x1xf32>
    %c0_2 = arith.constant 0 : index
    %c0_3 = arith.constant 0 : index
    %c0_4 = arith.constant 0 : index
    %1 = vector.load %arg4[%c0_2, %c0_3, %c0_4] : memref<6x16x1xf32, #tpu.memory_space<vmem>>, vector<6x16x1xf32>
    %c0_5 = arith.constant 0 : index
    %c0_6 = arith.constant 0 : index
    %c0_7 = arith.constant 0 : index
    %2 = vector.load %arg5[%c0_5, %c0_6, %c0_7] : memref<6x32x1xf32, #tpu.memory_space<vmem>>, vector<6x32x1xf32>
    %c0_8 = arith.constant 0 : index
    %c0_9 = arith.constant 0 : index
    %c0_10 = arith.constant 0 : index
    %3 = vector.load %arg6[%c0_8, %c0_9, %c0_10] : memref<6x32x1xf32, #tpu.memory_space<vmem>>, vector<6x32x1xf32>
    %c0_11 = arith.constant 0 : index
    %c0_12 = arith.constant 0 : index
    %4 = vector.load %arg7[%c0_11, %c0_12] : memref<29x15xf32, #tpu.memory_space<vmem>>, vector<29x15xf32>
    %c0_13 = arith.constant 0 : index
    %c0_14 = arith.constant 0 : index
    %5 = vector.load %arg8[%c0_13, %c0_14] : memref<12x6xf32, #tpu.memory_space<vmem>>, vector<12x6xf32>
    %c0_15 = arith.constant 0 : index
    %c0_16 = arith.constant 0 : index
    %c0_17 = arith.constant 0 : index
    %6 = vector.load %arg2[%c0_15, %c0_16, %c0_17] : memref<2x8x32xf32, #tpu.memory_space<vmem>>, vector<1x8x32xf32>
    %7 = vector.shape_cast %6 : vector<1x8x32xf32> to vector<8x32xf32>
    %8 = tpu.concatenate %7, %7 in 0 : vector<8x32xf32>, vector<8x32xf32> -> vector<16x32xf32>
    %cst = arith.constant 0.000000e+00 : f32
    %9 = vector.broadcast %cst : f32 to vector<16x2xf32>
    %10 = tpu.concatenate %9, %8, %9 in 1 : vector<16x2xf32>, vector<16x32xf32>, vector<16x2xf32> -> vector<16x36xf32>
    %11 = vector.extract_strided_slice %10 {offsets = [0, 0], sizes = [16, 32], strides = [1, 1]} : vector<16x36xf32> to vector<16x32xf32>
    %12 = vector.extract_strided_slice %0 {offsets = [0, 0, 0], sizes = [1, 16, 1], strides = [1, 1, 1]} : vector<6x16x1xf32> to vector<1x16x1xf32>
    %13 = vector.shape_cast %12 : vector<1x16x1xf32> to vector<16x1xf32>
    %14 = vector.broadcast %13 : vector<16x1xf32> to vector<16x32xf32>
    %15 = arith.mulf %11, %14 : vector<16x32xf32>
    %16 = vector.extract_strided_slice %10 {offsets = [0, 1], sizes = [16, 32], strides = [1, 1]} : vector<16x36xf32> to vector<16x32xf32>
    %17 = vector.extract_strided_slice %0 {offsets = [1, 0, 0], sizes = [1, 16, 1], strides = [1, 1, 1]} : vector<6x16x1xf32> to vector<1x16x1xf32>
    %18 = vector.shape_cast %17 : vector<1x16x1xf32> to vector<16x1xf32>
    %19 = vector.broadcast %18 : vector<16x1xf32> to vector<16x32xf32>
    %20 = arith.mulf %16, %19 : vector<16x32xf32>
    %21 = arith.addf %15, %20 : vector<16x32xf32>
    %22 = vector.extract_strided_slice %10 {offsets = [0, 2], sizes = [16, 32], strides = [1, 1]} : vector<16x36xf32> to vector<16x32xf32>
    %23 = vector.extract_strided_slice %0 {offsets = [2, 0, 0], sizes = [1, 16, 1], strides = [1, 1, 1]} : vector<6x16x1xf32> to vector<1x16x1xf32>
    %24 = vector.shape_cast %23 : vector<1x16x1xf32> to vector<16x1xf32>
    %25 = vector.broadcast %24 : vector<16x1xf32> to vector<16x32xf32>
    %26 = arith.mulf %22, %25 : vector<16x32xf32>
    %27 = arith.addf %21, %26 : vector<16x32xf32>
    %28 = vector.extract_strided_slice %10 {offsets = [0, 3], sizes = [16, 32], strides = [1, 1]} : vector<16x36xf32> to vector<16x32xf32>
    %29 = vector.extract_strided_slice %0 {offsets = [3, 0, 0], sizes = [1, 16, 1], strides = [1, 1, 1]} : vector<6x16x1xf32> to vector<1x16x1xf32>
    %30 = vector.shape_cast %29 : vector<1x16x1xf32> to vector<16x1xf32>
    %31 = vector.broadcast %30 : vector<16x1xf32> to vector<16x32xf32>
    %32 = arith.mulf %28, %31 : vector<16x32xf32>
    %33 = arith.addf %27, %32 : vector<16x32xf32>
    %34 = vector.extract_strided_slice %10 {offsets = [0, 4], sizes = [16, 32], strides = [1, 1]} : vector<16x36xf32> to vector<16x32xf32>
    %35 = vector.extract_strided_slice %0 {offsets = [4, 0, 0], sizes = [1, 16, 1], strides = [1, 1, 1]} : vector<6x16x1xf32> to vector<1x16x1xf32>
    %36 = vector.shape_cast %35 : vector<1x16x1xf32> to vector<16x1xf32>
    %37 = vector.broadcast %36 : vector<16x1xf32> to vector<16x32xf32>
    %38 = arith.mulf %34, %37 : vector<16x32xf32>
    %39 = arith.addf %33, %38 : vector<16x32xf32>
    %40 = vector.extract_strided_slice %0 {offsets = [5, 0, 0], sizes = [1, 16, 1], strides = [1, 1, 1]} : vector<6x16x1xf32> to vector<1x16x1xf32>
    %41 = vector.shape_cast %40 : vector<1x16x1xf32> to vector<16x1xf32>
    %42 = vector.broadcast %41 : vector<16x1xf32> to vector<16x32xf32>
    %43 = arith.addf %39, %42 : vector<16x32xf32>
    %cst_18 = arith.constant 0.000000e+00 : f32
    %44 = vector.broadcast %cst_18 : f32 to vector<16x32xf32>
    %45 = arith.cmpf ogt, %43, %44 : vector<16x32xf32>
    %46 = math.exp %43 : vector<16x32xf32>
    %cst_19 = arith.constant 1.000000e+00 : f32
    %47 = vector.broadcast %cst_19 : f32 to vector<16x32xf32>
    %48 = arith.subf %46, %47 : vector<16x32xf32>
    %cst_20 = arith.constant 1.000000e-01 : f32
    %49 = vector.broadcast %cst_20 : f32 to vector<16x32xf32>
    %50 = arith.mulf %49, %48 : vector<16x32xf32>
    %51 = arith.select %45, %43, %50 : vector<16x32xi1>, vector<16x32xf32>
    %52 = vector.extract_strided_slice %51 {offsets = [0, 0], sizes = [16, 29], strides = [1, 1]} : vector<16x32xf32> to vector<16x29xf32>
    %53 = vector.extract_strided_slice %51 {offsets = [0, 1], sizes = [16, 29], strides = [1, 1]} : vector<16x32xf32> to vector<16x29xf32>
    %54 = arith.addf %52, %53 : vector<16x29xf32>
    %55 = vector.extract_strided_slice %51 {offsets = [0, 2], sizes = [16, 29], strides = [1, 1]} : vector<16x32xf32> to vector<16x29xf32>
    %56 = arith.addf %54, %55 : vector<16x29xf32>
    %57 = vector.extract_strided_slice %51 {offsets = [0, 3], sizes = [16, 29], strides = [1, 1]} : vector<16x32xf32> to vector<16x29xf32>
    %58 = arith.addf %56, %57 : vector<16x29xf32>
    %cst_21 = arith.constant dense<0.000000e+00> : vector<16x15xf32>
    %59 = tpu.matmul %58, %4, %cst_21 {dimension_numbers = #tpu.dot_dimension_numbers<[1], [0], [0], [1], [0, 0, 1, 1], [], []>} : vector<16x29xf32>, vector<29x15xf32>, vector<16x15xf32> -> vector<16x15xf32>
    %cst_22 = arith.constant 0.000000e+00 : f32
    %60 = vector.broadcast %cst_22 : f32 to vector<16x2xf32>
    %61 = tpu.concatenate %60, %59, %60 in 1 : vector<16x2xf32>, vector<16x15xf32>, vector<16x2xf32> -> vector<16x19xf32>
    %62 = vector.extract_strided_slice %61 {offsets = [0, 0], sizes = [16, 15], strides = [1, 1]} : vector<16x19xf32> to vector<16x15xf32>
    %63 = vector.extract_strided_slice %1 {offsets = [0, 0, 0], sizes = [1, 16, 1], strides = [1, 1, 1]} : vector<6x16x1xf32> to vector<1x16x1xf32>
    %64 = vector.shape_cast %63 : vector<1x16x1xf32> to vector<16x1xf32>
    %65 = vector.broadcast %64 : vector<16x1xf32> to vector<16x15xf32>
    %66 = arith.mulf %62, %65 : vector<16x15xf32>
    %67 = vector.extract_strided_slice %61 {offsets = [0, 1], sizes = [16, 15], strides = [1, 1]} : vector<16x19xf32> to vector<16x15xf32>
    %68 = vector.extract_strided_slice %1 {offsets = [1, 0, 0], sizes = [1, 16, 1], strides = [1, 1, 1]} : vector<6x16x1xf32> to vector<1x16x1xf32>
    %69 = vector.shape_cast %68 : vector<1x16x1xf32> to vector<16x1xf32>
    %70 = vector.broadcast %69 : vector<16x1xf32> to vector<16x15xf32>
    %71 = arith.mulf %67, %70 : vector<16x15xf32>
    %72 = arith.addf %66, %71 : vector<16x15xf32>
    %73 = vector.extract_strided_slice %61 {offsets = [0, 2], sizes = [16, 15], strides = [1, 1]} : vector<16x19xf32> to vector<16x15xf32>
    %74 = vector.extract_strided_slice %1 {offsets = [2, 0, 0], sizes = [1, 16, 1], strides = [1, 1, 1]} : vector<6x16x1xf32> to vector<1x16x1xf32>
    %75 = vector.shape_cast %74 : vector<1x16x1xf32> to vector<16x1xf32>
    %76 = vector.broadcast %75 : vector<16x1xf32> to vector<16x15xf32>
    %77 = arith.mulf %73, %76 : vector<16x15xf32>
    %78 = arith.addf %72, %77 : vector<16x15xf32>
    %79 = vector.extract_strided_slice %61 {offsets = [0, 3], sizes = [16, 15], strides = [1, 1]} : vector<16x19xf32> to vector<16x15xf32>
    %80 = vector.extract_strided_slice %1 {offsets = [3, 0, 0], sizes = [1, 16, 1], strides = [1, 1, 1]} : vector<6x16x1xf32> to vector<1x16x1xf32>
    %81 = vector.shape_cast %80 : vector<1x16x1xf32> to vector<16x1xf32>
    %82 = vector.broadcast %81 : vector<16x1xf32> to vector<16x15xf32>
    %83 = arith.mulf %79, %82 : vector<16x15xf32>
    %84 = arith.addf %78, %83 : vector<16x15xf32>
    %85 = vector.extract_strided_slice %61 {offsets = [0, 4], sizes = [16, 15], strides = [1, 1]} : vector<16x19xf32> to vector<16x15xf32>
    %86 = vector.extract_strided_slice %1 {offsets = [4, 0, 0], sizes = [1, 16, 1], strides = [1, 1, 1]} : vector<6x16x1xf32> to vector<1x16x1xf32>
    %87 = vector.shape_cast %86 : vector<1x16x1xf32> to vector<16x1xf32>
    %88 = vector.broadcast %87 : vector<16x1xf32> to vector<16x15xf32>
    %89 = arith.mulf %85, %88 : vector<16x15xf32>
    %90 = arith.addf %84, %89 : vector<16x15xf32>
    %91 = vector.extract_strided_slice %1 {offsets = [5, 0, 0], sizes = [1, 16, 1], strides = [1, 1, 1]} : vector<6x16x1xf32> to vector<1x16x1xf32>
    %92 = vector.shape_cast %91 : vector<1x16x1xf32> to vector<16x1xf32>
    %93 = vector.broadcast %92 : vector<16x1xf32> to vector<16x15xf32>
    %94 = arith.addf %90, %93 : vector<16x15xf32>
    %cst_23 = arith.constant 0.000000e+00 : f32
    %95 = vector.broadcast %cst_23 : f32 to vector<16x15xf32>
    %96 = arith.cmpf ogt, %94, %95 : vector<16x15xf32>
    %97 = math.exp %94 : vector<16x15xf32>
    %cst_24 = arith.constant 1.000000e+00 : f32
    %98 = vector.broadcast %cst_24 : f32 to vector<16x15xf32>
    %99 = arith.subf %97, %98 : vector<16x15xf32>
    %cst_25 = arith.constant 1.000000e-01 : f32
    %100 = vector.broadcast %cst_25 : f32 to vector<16x15xf32>
    %101 = arith.mulf %100, %99 : vector<16x15xf32>
    %102 = arith.select %96, %94, %101 : vector<16x15xi1>, vector<16x15xf32>
    %103 = arith.addf %59, %102 : vector<16x15xf32>
    %104 = tpu.concatenate %103, %103 in 0 : vector<16x15xf32>, vector<16x15xf32> -> vector<32x15xf32>
    %cst_26 = arith.constant 0.000000e+00 : f32
    %105 = vector.broadcast %cst_26 : f32 to vector<32x2xf32>
    %106 = tpu.concatenate %105, %104, %105 in 1 : vector<32x2xf32>, vector<32x15xf32>, vector<32x2xf32> -> vector<32x19xf32>
    %107 = vector.extract_strided_slice %106 {offsets = [0, 0], sizes = [32, 15], strides = [1, 1]} : vector<32x19xf32> to vector<32x15xf32>
    %108 = vector.extract_strided_slice %2 {offsets = [0, 0, 0], sizes = [1, 32, 1], strides = [1, 1, 1]} : vector<6x32x1xf32> to vector<1x32x1xf32>
    %109 = vector.shape_cast %108 : vector<1x32x1xf32> to vector<32x1xf32>
    %110 = vector.broadcast %109 : vector<32x1xf32> to vector<32x15xf32>
    %111 = arith.mulf %107, %110 : vector<32x15xf32>
    %112 = vector.extract_strided_slice %106 {offsets = [0, 1], sizes = [32, 15], strides = [1, 1]} : vector<32x19xf32> to vector<32x15xf32>
    %113 = vector.extract_strided_slice %2 {offsets = [1, 0, 0], sizes = [1, 32, 1], strides = [1, 1, 1]} : vector<6x32x1xf32> to vector<1x32x1xf32>
    %114 = vector.shape_cast %113 : vector<1x32x1xf32> to vector<32x1xf32>
    %115 = vector.broadcast %114 : vector<32x1xf32> to vector<32x15xf32>
    %116 = arith.mulf %112, %115 : vector<32x15xf32>
    %117 = arith.addf %111, %116 : vector<32x15xf32>
    %118 = vector.extract_strided_slice %106 {offsets = [0, 2], sizes = [32, 15], strides = [1, 1]} : vector<32x19xf32> to vector<32x15xf32>
    %119 = vector.extract_strided_slice %2 {offsets = [2, 0, 0], sizes = [1, 32, 1], strides = [1, 1, 1]} : vector<6x32x1xf32> to vector<1x32x1xf32>
    %120 = vector.shape_cast %119 : vector<1x32x1xf32> to vector<32x1xf32>
    %121 = vector.broadcast %120 : vector<32x1xf32> to vector<32x15xf32>
    %122 = arith.mulf %118, %121 : vector<32x15xf32>
    %123 = arith.addf %117, %122 : vector<32x15xf32>
    %124 = vector.extract_strided_slice %106 {offsets = [0, 3], sizes = [32, 15], strides = [1, 1]} : vector<32x19xf32> to vector<32x15xf32>
    %125 = vector.extract_strided_slice %2 {offsets = [3, 0, 0], sizes = [1, 32, 1], strides = [1, 1, 1]} : vector<6x32x1xf32> to vector<1x32x1xf32>
    %126 = vector.shape_cast %125 : vector<1x32x1xf32> to vector<32x1xf32>
    %127 = vector.broadcast %126 : vector<32x1xf32> to vector<32x15xf32>
    %128 = arith.mulf %124, %127 : vector<32x15xf32>
    %129 = arith.addf %123, %128 : vector<32x15xf32>
    %130 = vector.extract_strided_slice %106 {offsets = [0, 4], sizes = [32, 15], strides = [1, 1]} : vector<32x19xf32> to vector<32x15xf32>
    %131 = vector.extract_strided_slice %2 {offsets = [4, 0, 0], sizes = [1, 32, 1], strides = [1, 1, 1]} : vector<6x32x1xf32> to vector<1x32x1xf32>
    %132 = vector.shape_cast %131 : vector<1x32x1xf32> to vector<32x1xf32>
    %133 = vector.broadcast %132 : vector<32x1xf32> to vector<32x15xf32>
    %134 = arith.mulf %130, %133 : vector<32x15xf32>
    %135 = arith.addf %129, %134 : vector<32x15xf32>
    %136 = vector.extract_strided_slice %2 {offsets = [5, 0, 0], sizes = [1, 32, 1], strides = [1, 1, 1]} : vector<6x32x1xf32> to vector<1x32x1xf32>
    %137 = vector.shape_cast %136 : vector<1x32x1xf32> to vector<32x1xf32>
    %138 = vector.broadcast %137 : vector<32x1xf32> to vector<32x15xf32>
    %139 = arith.addf %135, %138 : vector<32x15xf32>
    %cst_27 = arith.constant 0.000000e+00 : f32
    %140 = vector.broadcast %cst_27 : f32 to vector<32x15xf32>
    %141 = arith.cmpf ogt, %139, %140 : vector<32x15xf32>
    %142 = math.exp %139 : vector<32x15xf32>
    %cst_28 = arith.constant 1.000000e+00 : f32
    %143 = vector.broadcast %cst_28 : f32 to vector<32x15xf32>
    %144 = arith.subf %142, %143 : vector<32x15xf32>
    %cst_29 = arith.constant 1.000000e-01 : f32
    %145 = vector.broadcast %cst_29 : f32 to vector<32x15xf32>
    %146 = arith.mulf %145, %144 : vector<32x15xf32>
    %147 = arith.select %141, %139, %146 : vector<32x15xi1>, vector<32x15xf32>
    %148 = vector.extract_strided_slice %147 {offsets = [0, 0], sizes = [32, 12], strides = [1, 1]} : vector<32x15xf32> to vector<32x12xf32>
    %149 = vector.extract_strided_slice %147 {offsets = [0, 1], sizes = [32, 12], strides = [1, 1]} : vector<32x15xf32> to vector<32x12xf32>
    %150 = arith.addf %148, %149 : vector<32x12xf32>
    %151 = vector.extract_strided_slice %147 {offsets = [0, 2], sizes = [32, 12], strides = [1, 1]} : vector<32x15xf32> to vector<32x12xf32>
    %152 = arith.addf %150, %151 : vector<32x12xf32>
    %153 = vector.extract_strided_slice %147 {offsets = [0, 3], sizes = [32, 12], strides = [1, 1]} : vector<32x15xf32> to vector<32x12xf32>
    %154 = arith.addf %152, %153 : vector<32x12xf32>
    %cst_30 = arith.constant dense<0.000000e+00> : vector<32x6xf32>
    %155 = tpu.matmul %154, %5, %cst_30 {dimension_numbers = #tpu.dot_dimension_numbers<[1], [0], [0], [1], [0, 0, 1, 1], [], []>} : vector<32x12xf32>, vector<12x6xf32>, vector<32x6xf32> -> vector<32x6xf32>
    %cst_31 = arith.constant 0.000000e+00 : f32
    %156 = vector.broadcast %cst_31 : f32 to vector<32x2xf32>
    %157 = tpu.concatenate %156, %155, %156 in 1 : vector<32x2xf32>, vector<32x6xf32>, vector<32x2xf32> -> vector<32x10xf32>
    %158 = vector.extract_strided_slice %157 {offsets = [0, 0], sizes = [32, 6], strides = [1, 1]} : vector<32x10xf32> to vector<32x6xf32>
    %159 = vector.extract_strided_slice %3 {offsets = [0, 0, 0], sizes = [1, 32, 1], strides = [1, 1, 1]} : vector<6x32x1xf32> to vector<1x32x1xf32>
    %160 = vector.shape_cast %159 : vector<1x32x1xf32> to vector<32x1xf32>
    %161 = vector.broadcast %160 : vector<32x1xf32> to vector<32x6xf32>
    %162 = arith.mulf %158, %161 : vector<32x6xf32>
    %163 = vector.extract_strided_slice %157 {offsets = [0, 1], sizes = [32, 6], strides = [1, 1]} : vector<32x10xf32> to vector<32x6xf32>
    %164 = vector.extract_strided_slice %3 {offsets = [1, 0, 0], sizes = [1, 32, 1], strides = [1, 1, 1]} : vector<6x32x1xf32> to vector<1x32x1xf32>
    %165 = vector.shape_cast %164 : vector<1x32x1xf32> to vector<32x1xf32>
    %166 = vector.broadcast %165 : vector<32x1xf32> to vector<32x6xf32>
    %167 = arith.mulf %163, %166 : vector<32x6xf32>
    %168 = arith.addf %162, %167 : vector<32x6xf32>
    %169 = vector.extract_strided_slice %157 {offsets = [0, 2], sizes = [32, 6], strides = [1, 1]} : vector<32x10xf32> to vector<32x6xf32>
    %170 = vector.extract_strided_slice %3 {offsets = [2, 0, 0], sizes = [1, 32, 1], strides = [1, 1, 1]} : vector<6x32x1xf32> to vector<1x32x1xf32>
    %171 = vector.shape_cast %170 : vector<1x32x1xf32> to vector<32x1xf32>
    %172 = vector.broadcast %171 : vector<32x1xf32> to vector<32x6xf32>
    %173 = arith.mulf %169, %172 : vector<32x6xf32>
    %174 = arith.addf %168, %173 : vector<32x6xf32>
    %175 = vector.extract_strided_slice %157 {offsets = [0, 3], sizes = [32, 6], strides = [1, 1]} : vector<32x10xf32> to vector<32x6xf32>
    %176 = vector.extract_strided_slice %3 {offsets = [3, 0, 0], sizes = [1, 32, 1], strides = [1, 1, 1]} : vector<6x32x1xf32> to vector<1x32x1xf32>
    %177 = vector.shape_cast %176 : vector<1x32x1xf32> to vector<32x1xf32>
    %178 = vector.broadcast %177 : vector<32x1xf32> to vector<32x6xf32>
    %179 = arith.mulf %175, %178 : vector<32x6xf32>
    %180 = arith.addf %174, %179 : vector<32x6xf32>
    %181 = vector.extract_strided_slice %157 {offsets = [0, 4], sizes = [32, 6], strides = [1, 1]} : vector<32x10xf32> to vector<32x6xf32>
    %182 = vector.extract_strided_slice %3 {offsets = [4, 0, 0], sizes = [1, 32, 1], strides = [1, 1, 1]} : vector<6x32x1xf32> to vector<1x32x1xf32>
    %183 = vector.shape_cast %182 : vector<1x32x1xf32> to vector<32x1xf32>
    %184 = vector.broadcast %183 : vector<32x1xf32> to vector<32x6xf32>
    %185 = arith.mulf %181, %184 : vector<32x6xf32>
    %186 = arith.addf %180, %185 : vector<32x6xf32>
    %187 = vector.extract_strided_slice %3 {offsets = [5, 0, 0], sizes = [1, 32, 1], strides = [1, 1, 1]} : vector<6x32x1xf32> to vector<1x32x1xf32>
    %188 = vector.shape_cast %187 : vector<1x32x1xf32> to vector<32x1xf32>
    %189 = vector.broadcast %188 : vector<32x1xf32> to vector<32x6xf32>
    %190 = arith.addf %186, %189 : vector<32x6xf32>
    %cst_32 = arith.constant 0.000000e+00 : f32
    %191 = vector.broadcast %cst_32 : f32 to vector<32x6xf32>
    %192 = arith.cmpf ogt, %190, %191 : vector<32x6xf32>
    %193 = math.exp %190 : vector<32x6xf32>
    %cst_33 = arith.constant 1.000000e+00 : f32
    %194 = vector.broadcast %cst_33 : f32 to vector<32x6xf32>
    %195 = arith.subf %193, %194 : vector<32x6xf32>
    %cst_34 = arith.constant 1.000000e-01 : f32
    %196 = vector.broadcast %cst_34 : f32 to vector<32x6xf32>
    %197 = arith.mulf %196, %195 : vector<32x6xf32>
    %198 = arith.select %192, %190, %197 : vector<32x6xi1>, vector<32x6xf32>
    %199 = arith.addf %155, %198 : vector<32x6xf32>
    %c0_35 = arith.constant 0 : index
    %c0_36 = arith.constant 0 : index
    %c0_37 = arith.constant 0 : index
    %200 = vector.load %arg9[%c0_35, %c0_36, %c0_37] : memref<2x32x6xf32, #tpu.memory_space<vmem>>, vector<1x32x6xf32>
    %201 = vector.shape_cast %200 : vector<1x32x6xf32> to vector<32x6xf32>
    %202 = vector.shape_cast %199 : vector<32x6xf32> to vector<1x32x6xf32>
    tpu.vector_store %arg9[%c0_35, %c0_36, %c0_37], %202 {strides = array<i32>} : memref<2x32x6xf32, #tpu.memory_space<vmem>>, vector<1x32x6xf32>,
    %c1 = arith.constant 1 : index
    %c0_38 = arith.constant 0 : index
    %c0_39 = arith.constant 0 : index
    %203 = vector.load %arg2[%c1, %c0_38, %c0_39] : memref<2x8x32xf32, #tpu.memory_space<vmem>>, vector<1x8x32xf32>
    %204 = vector.shape_cast %203 : vector<1x8x32xf32> to vector<8x32xf32>
    %205 = tpu.concatenate %204, %204 in 0 : vector<8x32xf32>, vector<8x32xf32> -> vector<16x32xf32>
    %cst_40 = arith.constant 0.000000e+00 : f32
    %206 = vector.broadcast %cst_40 : f32 to vector<16x2xf32>
    %207 = tpu.concatenate %206, %205, %206 in 1 : vector<16x2xf32>, vector<16x32xf32>, vector<16x2xf32> -> vector<16x36xf32>
    %208 = vector.extract_strided_slice %207 {offsets = [0, 0], sizes = [16, 32], strides = [1, 1]} : vector<16x36xf32> to vector<16x32xf32>
    %209 = vector.extract_strided_slice %0 {offsets = [0, 0, 0], sizes = [1, 16, 1], strides = [1, 1, 1]} : vector<6x16x1xf32> to vector<1x16x1xf32>
    %210 = vector.shape_cast %209 : vector<1x16x1xf32> to vector<16x1xf32>
    %211 = vector.broadcast %210 : vector<16x1xf32> to vector<16x32xf32>
    %212 = arith.mulf %208, %211 : vector<16x32xf32>
    %213 = vector.extract_strided_slice %207 {offsets = [0, 1], sizes = [16, 32], strides = [1, 1]} : vector<16x36xf32> to vector<16x32xf32>
    %214 = vector.extract_strided_slice %0 {offsets = [1, 0, 0], sizes = [1, 16, 1], strides = [1, 1, 1]} : vector<6x16x1xf32> to vector<1x16x1xf32>
    %215 = vector.shape_cast %214 : vector<1x16x1xf32> to vector<16x1xf32>
    %216 = vector.broadcast %215 : vector<16x1xf32> to vector<16x32xf32>
    %217 = arith.mulf %213, %216 : vector<16x32xf32>
    %218 = arith.addf %212, %217 : vector<16x32xf32>
    %219 = vector.extract_strided_slice %207 {offsets = [0, 2], sizes = [16, 32], strides = [1, 1]} : vector<16x36xf32> to vector<16x32xf32>
    %220 = vector.extract_strided_slice %0 {offsets = [2, 0, 0], sizes = [1, 16, 1], strides = [1, 1, 1]} : vector<6x16x1xf32> to vector<1x16x1xf32>
    %221 = vector.shape_cast %220 : vector<1x16x1xf32> to vector<16x1xf32>
    %222 = vector.broadcast %221 : vector<16x1xf32> to vector<16x32xf32>
    %223 = arith.mulf %219, %222 : vector<16x32xf32>
    %224 = arith.addf %218, %223 : vector<16x32xf32>
    %225 = vector.extract_strided_slice %207 {offsets = [0, 3], sizes = [16, 32], strides = [1, 1]} : vector<16x36xf32> to vector<16x32xf32>
    %226 = vector.extract_strided_slice %0 {offsets = [3, 0, 0], sizes = [1, 16, 1], strides = [1, 1, 1]} : vector<6x16x1xf32> to vector<1x16x1xf32>
    %227 = vector.shape_cast %226 : vector<1x16x1xf32> to vector<16x1xf32>
    %228 = vector.broadcast %227 : vector<16x1xf32> to vector<16x32xf32>
    %229 = arith.mulf %225, %228 : vector<16x32xf32>
    %230 = arith.addf %224, %229 : vector<16x32xf32>
    %231 = vector.extract_strided_slice %207 {offsets = [0, 4], sizes = [16, 32], strides = [1, 1]} : vector<16x36xf32> to vector<16x32xf32>
    %232 = vector.extract_strided_slice %0 {offsets = [4, 0, 0], sizes = [1, 16, 1], strides = [1, 1, 1]} : vector<6x16x1xf32> to vector<1x16x1xf32>
    %233 = vector.shape_cast %232 : vector<1x16x1xf32> to vector<16x1xf32>
    %234 = vector.broadcast %233 : vector<16x1xf32> to vector<16x32xf32>
    %235 = arith.mulf %231, %234 : vector<16x32xf32>
    %236 = arith.addf %230, %235 : vector<16x32xf32>
    %237 = vector.extract_strided_slice %0 {offsets = [5, 0, 0], sizes = [1, 16, 1], strides = [1, 1, 1]} : vector<6x16x1xf32> to vector<1x16x1xf32>
    %238 = vector.shape_cast %237 : vector<1x16x1xf32> to vector<16x1xf32>
    %239 = vector.broadcast %238 : vector<16x1xf32> to vector<16x32xf32>
    %240 = arith.addf %236, %239 : vector<16x32xf32>
    %cst_41 = arith.constant 0.000000e+00 : f32
    %241 = vector.broadcast %cst_41 : f32 to vector<16x32xf32>
    %242 = arith.cmpf ogt, %240, %241 : vector<16x32xf32>
    %243 = math.exp %240 : vector<16x32xf32>
    %cst_42 = arith.constant 1.000000e+00 : f32
    %244 = vector.broadcast %cst_42 : f32 to vector<16x32xf32>
    %245 = arith.subf %243, %244 : vector<16x32xf32>
    %cst_43 = arith.constant 1.000000e-01 : f32
    %246 = vector.broadcast %cst_43 : f32 to vector<16x32xf32>
    %247 = arith.mulf %246, %245 : vector<16x32xf32>
    %248 = arith.select %242, %240, %247 : vector<16x32xi1>, vector<16x32xf32>
    %249 = vector.extract_strided_slice %248 {offsets = [0, 0], sizes = [16, 29], strides = [1, 1]} : vector<16x32xf32> to vector<16x29xf32>
    %250 = vector.extract_strided_slice %248 {offsets = [0, 1], sizes = [16, 29], strides = [1, 1]} : vector<16x32xf32> to vector<16x29xf32>
    %251 = arith.addf %249, %250 : vector<16x29xf32>
    %252 = vector.extract_strided_slice %248 {offsets = [0, 2], sizes = [16, 29], strides = [1, 1]} : vector<16x32xf32> to vector<16x29xf32>
    %253 = arith.addf %251, %252 : vector<16x29xf32>
    %254 = vector.extract_strided_slice %248 {offsets = [0, 3], sizes = [16, 29], strides = [1, 1]} : vector<16x32xf32> to vector<16x29xf32>
    %255 = arith.addf %253, %254 : vector<16x29xf32>
    %cst_44 = arith.constant dense<0.000000e+00> : vector<16x15xf32>
    %256 = tpu.matmul %255, %4, %cst_44 {dimension_numbers = #tpu.dot_dimension_numbers<[1], [0], [0], [1], [0, 0, 1, 1], [], []>} : vector<16x29xf32>, vector<29x15xf32>, vector<16x15xf32> -> vector<16x15xf32>
    %cst_45 = arith.constant 0.000000e+00 : f32
    %257 = vector.broadcast %cst_45 : f32 to vector<16x2xf32>
    %258 = tpu.concatenate %257, %256, %257 in 1 : vector<16x2xf32>, vector<16x15xf32>, vector<16x2xf32> -> vector<16x19xf32>
    %259 = vector.extract_strided_slice %258 {offsets = [0, 0], sizes = [16, 15], strides = [1, 1]} : vector<16x19xf32> to vector<16x15xf32>
    %260 = vector.extract_strided_slice %1 {offsets = [0, 0, 0], sizes = [1, 16, 1], strides = [1, 1, 1]} : vector<6x16x1xf32> to vector<1x16x1xf32>
    %261 = vector.shape_cast %260 : vector<1x16x1xf32> to vector<16x1xf32>
    %262 = vector.broadcast %261 : vector<16x1xf32> to vector<16x15xf32>
    %263 = arith.mulf %259, %262 : vector<16x15xf32>
    %264 = vector.extract_strided_slice %258 {offsets = [0, 1], sizes = [16, 15], strides = [1, 1]} : vector<16x19xf32> to vector<16x15xf32>
    %265 = vector.extract_strided_slice %1 {offsets = [1, 0, 0], sizes = [1, 16, 1], strides = [1, 1, 1]} : vector<6x16x1xf32> to vector<1x16x1xf32>
    %266 = vector.shape_cast %265 : vector<1x16x1xf32> to vector<16x1xf32>
    %267 = vector.broadcast %266 : vector<16x1xf32> to vector<16x15xf32>
    %268 = arith.mulf %264, %267 : vector<16x15xf32>
    %269 = arith.addf %263, %268 : vector<16x15xf32>
    %270 = vector.extract_strided_slice %258 {offsets = [0, 2], sizes = [16, 15], strides = [1, 1]} : vector<16x19xf32> to vector<16x15xf32>
    %271 = vector.extract_strided_slice %1 {offsets = [2, 0, 0], sizes = [1, 16, 1], strides = [1, 1, 1]} : vector<6x16x1xf32> to vector<1x16x1xf32>
    %272 = vector.shape_cast %271 : vector<1x16x1xf32> to vector<16x1xf32>
    %273 = vector.broadcast %272 : vector<16x1xf32> to vector<16x15xf32>
    %274 = arith.mulf %270, %273 : vector<16x15xf32>
    %275 = arith.addf %269, %274 : vector<16x15xf32>
    %276 = vector.extract_strided_slice %258 {offsets = [0, 3], sizes = [16, 15], strides = [1, 1]} : vector<16x19xf32> to vector<16x15xf32>
    %277 = vector.extract_strided_slice %1 {offsets = [3, 0, 0], sizes = [1, 16, 1], strides = [1, 1, 1]} : vector<6x16x1xf32> to vector<1x16x1xf32>
    %278 = vector.shape_cast %277 : vector<1x16x1xf32> to vector<16x1xf32>
    %279 = vector.broadcast %278 : vector<16x1xf32> to vector<16x15xf32>
    %280 = arith.mulf %276, %279 : vector<16x15xf32>
    %281 = arith.addf %275, %280 : vector<16x15xf32>
    %282 = vector.extract_strided_slice %258 {offsets = [0, 4], sizes = [16, 15], strides = [1, 1]} : vector<16x19xf32> to vector<16x15xf32>
    %283 = vector.extract_strided_slice %1 {offsets = [4, 0, 0], sizes = [1, 16, 1], strides = [1, 1, 1]} : vector<6x16x1xf32> to vector<1x16x1xf32>
    %284 = vector.shape_cast %283 : vector<1x16x1xf32> to vector<16x1xf32>
    %285 = vector.broadcast %284 : vector<16x1xf32> to vector<16x15xf32>
    %286 = arith.mulf %282, %285 : vector<16x15xf32>
    %287 = arith.addf %281, %286 : vector<16x15xf32>
    %288 = vector.extract_strided_slice %1 {offsets = [5, 0, 0], sizes = [1, 16, 1], strides = [1, 1, 1]} : vector<6x16x1xf32> to vector<1x16x1xf32>
    %289 = vector.shape_cast %288 : vector<1x16x1xf32> to vector<16x1xf32>
    %290 = vector.broadcast %289 : vector<16x1xf32> to vector<16x15xf32>
    %291 = arith.addf %287, %290 : vector<16x15xf32>
    %cst_46 = arith.constant 0.000000e+00 : f32
    %292 = vector.broadcast %cst_46 : f32 to vector<16x15xf32>
    %293 = arith.cmpf ogt, %291, %292 : vector<16x15xf32>
    %294 = math.exp %291 : vector<16x15xf32>
    %cst_47 = arith.constant 1.000000e+00 : f32
    %295 = vector.broadcast %cst_47 : f32 to vector<16x15xf32>
    %296 = arith.subf %294, %295 : vector<16x15xf32>
    %cst_48 = arith.constant 1.000000e-01 : f32
    %297 = vector.broadcast %cst_48 : f32 to vector<16x15xf32>
    %298 = arith.mulf %297, %296 : vector<16x15xf32>
    %299 = arith.select %293, %291, %298 : vector<16x15xi1>, vector<16x15xf32>
    %300 = arith.addf %256, %299 : vector<16x15xf32>
    %301 = tpu.concatenate %300, %300 in 0 : vector<16x15xf32>, vector<16x15xf32> -> vector<32x15xf32>
    %cst_49 = arith.constant 0.000000e+00 : f32
    %302 = vector.broadcast %cst_49 : f32 to vector<32x2xf32>
    %303 = tpu.concatenate %302, %301, %302 in 1 : vector<32x2xf32>, vector<32x15xf32>, vector<32x2xf32> -> vector<32x19xf32>
    %304 = vector.extract_strided_slice %303 {offsets = [0, 0], sizes = [32, 15], strides = [1, 1]} : vector<32x19xf32> to vector<32x15xf32>
    %305 = vector.extract_strided_slice %2 {offsets = [0, 0, 0], sizes = [1, 32, 1], strides = [1, 1, 1]} : vector<6x32x1xf32> to vector<1x32x1xf32>
    %306 = vector.shape_cast %305 : vector<1x32x1xf32> to vector<32x1xf32>
    %307 = vector.broadcast %306 : vector<32x1xf32> to vector<32x15xf32>
    %308 = arith.mulf %304, %307 : vector<32x15xf32>
    %309 = vector.extract_strided_slice %303 {offsets = [0, 1], sizes = [32, 15], strides = [1, 1]} : vector<32x19xf32> to vector<32x15xf32>
    %310 = vector.extract_strided_slice %2 {offsets = [1, 0, 0], sizes = [1, 32, 1], strides = [1, 1, 1]} : vector<6x32x1xf32> to vector<1x32x1xf32>
    %311 = vector.shape_cast %310 : vector<1x32x1xf32> to vector<32x1xf32>
    %312 = vector.broadcast %311 : vector<32x1xf32> to vector<32x15xf32>
    %313 = arith.mulf %309, %312 : vector<32x15xf32>
    %314 = arith.addf %308, %313 : vector<32x15xf32>
    %315 = vector.extract_strided_slice %303 {offsets = [0, 2], sizes = [32, 15], strides = [1, 1]} : vector<32x19xf32> to vector<32x15xf32>
    %316 = vector.extract_strided_slice %2 {offsets = [2, 0, 0], sizes = [1, 32, 1], strides = [1, 1, 1]} : vector<6x32x1xf32> to vector<1x32x1xf32>
    %317 = vector.shape_cast %316 : vector<1x32x1xf32> to vector<32x1xf32>
    %318 = vector.broadcast %317 : vector<32x1xf32> to vector<32x15xf32>
    %319 = arith.mulf %315, %318 : vector<32x15xf32>
    %320 = arith.addf %314, %319 : vector<32x15xf32>
    %321 = vector.extract_strided_slice %303 {offsets = [0, 3], sizes = [32, 15], strides = [1, 1]} : vector<32x19xf32> to vector<32x15xf32>
    %322 = vector.extract_strided_slice %2 {offsets = [3, 0, 0], sizes = [1, 32, 1], strides = [1, 1, 1]} : vector<6x32x1xf32> to vector<1x32x1xf32>
    %323 = vector.shape_cast %322 : vector<1x32x1xf32> to vector<32x1xf32>
    %324 = vector.broadcast %323 : vector<32x1xf32> to vector<32x15xf32>
    %325 = arith.mulf %321, %324 : vector<32x15xf32>
    %326 = arith.addf %320, %325 : vector<32x15xf32>
    %327 = vector.extract_strided_slice %303 {offsets = [0, 4], sizes = [32, 15], strides = [1, 1]} : vector<32x19xf32> to vector<32x15xf32>
    %328 = vector.extract_strided_slice %2 {offsets = [4, 0, 0], sizes = [1, 32, 1], strides = [1, 1, 1]} : vector<6x32x1xf32> to vector<1x32x1xf32>
    %329 = vector.shape_cast %328 : vector<1x32x1xf32> to vector<32x1xf32>
    %330 = vector.broadcast %329 : vector<32x1xf32> to vector<32x15xf32>
    %331 = arith.mulf %327, %330 : vector<32x15xf32>
    %332 = arith.addf %326, %331 : vector<32x15xf32>
    %333 = vector.extract_strided_slice %2 {offsets = [5, 0, 0], sizes = [1, 32, 1], strides = [1, 1, 1]} : vector<6x32x1xf32> to vector<1x32x1xf32>
    %334 = vector.shape_cast %333 : vector<1x32x1xf32> to vector<32x1xf32>
    %335 = vector.broadcast %334 : vector<32x1xf32> to vector<32x15xf32>
    %336 = arith.addf %332, %335 : vector<32x15xf32>
    %cst_50 = arith.constant 0.000000e+00 : f32
    %337 = vector.broadcast %cst_50 : f32 to vector<32x15xf32>
    %338 = arith.cmpf ogt, %336, %337 : vector<32x15xf32>
    %339 = math.exp %336 : vector<32x15xf32>
    %cst_51 = arith.constant 1.000000e+00 : f32
    %340 = vector.broadcast %cst_51 : f32 to vector<32x15xf32>
    %341 = arith.subf %339, %340 : vector<32x15xf32>
    %cst_52 = arith.constant 1.000000e-01 : f32
    %342 = vector.broadcast %cst_52 : f32 to vector<32x15xf32>
    %343 = arith.mulf %342, %341 : vector<32x15xf32>
    %344 = arith.select %338, %336, %343 : vector<32x15xi1>, vector<32x15xf32>
    %345 = vector.extract_strided_slice %344 {offsets = [0, 0], sizes = [32, 12], strides = [1, 1]} : vector<32x15xf32> to vector<32x12xf32>
    %346 = vector.extract_strided_slice %344 {offsets = [0, 1], sizes = [32, 12], strides = [1, 1]} : vector<32x15xf32> to vector<32x12xf32>
    %347 = arith.addf %345, %346 : vector<32x12xf32>
    %348 = vector.extract_strided_slice %344 {offsets = [0, 2], sizes = [32, 12], strides = [1, 1]} : vector<32x15xf32> to vector<32x12xf32>
    %349 = arith.addf %347, %348 : vector<32x12xf32>
    %350 = vector.extract_strided_slice %344 {offsets = [0, 3], sizes = [32, 12], strides = [1, 1]} : vector<32x15xf32> to vector<32x12xf32>
    %351 = arith.addf %349, %350 : vector<32x12xf32>
    %cst_53 = arith.constant dense<0.000000e+00> : vector<32x6xf32>
    %352 = tpu.matmul %351, %5, %cst_53 {dimension_numbers = #tpu.dot_dimension_numbers<[1], [0], [0], [1], [0, 0, 1, 1], [], []>} : vector<32x12xf32>, vector<12x6xf32>, vector<32x6xf32> -> vector<32x6xf32>
    %cst_54 = arith.constant 0.000000e+00 : f32
    %353 = vector.broadcast %cst_54 : f32 to vector<32x2xf32>
    %354 = tpu.concatenate %353, %352, %353 in 1 : vector<32x2xf32>, vector<32x6xf32>, vector<32x2xf32> -> vector<32x10xf32>
    %355 = vector.extract_strided_slice %354 {offsets = [0, 0], sizes = [32, 6], strides = [1, 1]} : vector<32x10xf32> to vector<32x6xf32>
    %356 = vector.extract_strided_slice %3 {offsets = [0, 0, 0], sizes = [1, 32, 1], strides = [1, 1, 1]} : vector<6x32x1xf32> to vector<1x32x1xf32>
    %357 = vector.shape_cast %356 : vector<1x32x1xf32> to vector<32x1xf32>
    %358 = vector.broadcast %357 : vector<32x1xf32> to vector<32x6xf32>
    %359 = arith.mulf %355, %358 : vector<32x6xf32>
    %360 = vector.extract_strided_slice %354 {offsets = [0, 1], sizes = [32, 6], strides = [1, 1]} : vector<32x10xf32> to vector<32x6xf32>
    %361 = vector.extract_strided_slice %3 {offsets = [1, 0, 0], sizes = [1, 32, 1], strides = [1, 1, 1]} : vector<6x32x1xf32> to vector<1x32x1xf32>
    %362 = vector.shape_cast %361 : vector<1x32x1xf32> to vector<32x1xf32>
    %363 = vector.broadcast %362 : vector<32x1xf32> to vector<32x6xf32>
    %364 = arith.mulf %360, %363 : vector<32x6xf32>
    %365 = arith.addf %359, %364 : vector<32x6xf32>
    %366 = vector.extract_strided_slice %354 {offsets = [0, 2], sizes = [32, 6], strides = [1, 1]} : vector<32x10xf32> to vector<32x6xf32>
    %367 = vector.extract_strided_slice %3 {offsets = [2, 0, 0], sizes = [1, 32, 1], strides = [1, 1, 1]} : vector<6x32x1xf32> to vector<1x32x1xf32>
    %368 = vector.shape_cast %367 : vector<1x32x1xf32> to vector<32x1xf32>
    %369 = vector.broadcast %368 : vector<32x1xf32> to vector<32x6xf32>
    %370 = arith.mulf %366, %369 : vector<32x6xf32>
    %371 = arith.addf %365, %370 : vector<32x6xf32>
    %372 = vector.extract_strided_slice %354 {offsets = [0, 3], sizes = [32, 6], strides = [1, 1]} : vector<32x10xf32> to vector<32x6xf32>
    %373 = vector.extract_strided_slice %3 {offsets = [3, 0, 0], sizes = [1, 32, 1], strides = [1, 1, 1]} : vector<6x32x1xf32> to vector<1x32x1xf32>
    %374 = vector.shape_cast %373 : vector<1x32x1xf32> to vector<32x1xf32>
    %375 = vector.broadcast %374 : vector<32x1xf32> to vector<32x6xf32>
    %376 = arith.mulf %372, %375 : vector<32x6xf32>
    %377 = arith.addf %371, %376 : vector<32x6xf32>
    %378 = vector.extract_strided_slice %354 {offsets = [0, 4], sizes = [32, 6], strides = [1, 1]} : vector<32x10xf32> to vector<32x6xf32>
    %379 = vector.extract_strided_slice %3 {offsets = [4, 0, 0], sizes = [1, 32, 1], strides = [1, 1, 1]} : vector<6x32x1xf32> to vector<1x32x1xf32>
    %380 = vector.shape_cast %379 : vector<1x32x1xf32> to vector<32x1xf32>
    %381 = vector.broadcast %380 : vector<32x1xf32> to vector<32x6xf32>
    %382 = arith.mulf %378, %381 : vector<32x6xf32>
    %383 = arith.addf %377, %382 : vector<32x6xf32>
    %384 = vector.extract_strided_slice %3 {offsets = [5, 0, 0], sizes = [1, 32, 1], strides = [1, 1, 1]} : vector<6x32x1xf32> to vector<1x32x1xf32>
    %385 = vector.shape_cast %384 : vector<1x32x1xf32> to vector<32x1xf32>
    %386 = vector.broadcast %385 : vector<32x1xf32> to vector<32x6xf32>
    %387 = arith.addf %383, %386 : vector<32x6xf32>
    %cst_55 = arith.constant 0.000000e+00 : f32
    %388 = vector.broadcast %cst_55 : f32 to vector<32x6xf32>
    %389 = arith.cmpf ogt, %387, %388 : vector<32x6xf32>
    %390 = math.exp %387 : vector<32x6xf32>
    %cst_56 = arith.constant 1.000000e+00 : f32
    %391 = vector.broadcast %cst_56 : f32 to vector<32x6xf32>
    %392 = arith.subf %390, %391 : vector<32x6xf32>
    %cst_57 = arith.constant 1.000000e-01 : f32
    %393 = vector.broadcast %cst_57 : f32 to vector<32x6xf32>
    %394 = arith.mulf %393, %392 : vector<32x6xf32>
    %395 = arith.select %389, %387, %394 : vector<32x6xi1>, vector<32x6xf32>
    %396 = arith.addf %352, %395 : vector<32x6xf32>
    %c1_58 = arith.constant 1 : index
    %c0_59 = arith.constant 0 : index
    %c0_60 = arith.constant 0 : index
    %397 = vector.load %arg9[%c1_58, %c0_59, %c0_60] : memref<2x32x6xf32, #tpu.memory_space<vmem>>, vector<1x32x6xf32>
    %398 = vector.shape_cast %397 : vector<1x32x6xf32> to vector<32x6xf32>
    %399 = vector.shape_cast %396 : vector<32x6xf32> to vector<1x32x6xf32>
    tpu.vector_store %arg9[%c1_58, %c0_59, %c0_60], %399 {strides = array<i32>} : memref<2x32x6xf32, #tpu.memory_space<vmem>>, vector<1x32x6xf32>,
    return
  }
  func.func @transform_0(%arg0: i32, %arg1: i32) -> (i32, i32, i32) {
    %c0_i32 = arith.constant 0 : i32
    %c0_i32_0 = arith.constant 0 : i32
    return %arg1, %arg0, %c0_i32 : i32, i32, i32
  }
  func.func @transform_1(%arg0: i32, %arg1: i32) -> (i32, i32, i32) {
    %c0_i32 = arith.constant 0 : i32
    %c0_i32_0 = arith.constant 0 : i32
    %c0_i32_1 = arith.constant 0 : i32
    return %c0_i32, %arg0, %c0_i32_0 : i32, i32, i32
  }
  func.func @transform_2(%arg0: i32, %arg1: i32) -> (i32, i32, i32) {
    %c0_i32 = arith.constant 0 : i32
    %c0_i32_0 = arith.constant 0 : i32
    %c0_i32_1 = arith.constant 0 : i32
    return %c0_i32, %arg0, %c0_i32_0 : i32, i32, i32
  }
  func.func @transform_3(%arg0: i32, %arg1: i32) -> (i32, i32, i32) {
    %c0_i32 = arith.constant 0 : i32
    %c0_i32_0 = arith.constant 0 : i32
    %c0_i32_1 = arith.constant 0 : i32
    return %c0_i32, %arg0, %c0_i32_0 : i32, i32, i32
  }
  func.func @transform_4(%arg0: i32, %arg1: i32) -> (i32, i32, i32) {
    %c0_i32 = arith.constant 0 : i32
    %c0_i32_0 = arith.constant 0 : i32
    %c0_i32_1 = arith.constant 0 : i32
    return %c0_i32, %arg0, %c0_i32_0 : i32, i32, i32
  }
  func.func @transform_5(%arg0: i32, %arg1: i32) -> (i32, i32) {
    %c0_i32 = arith.constant 0 : i32
    %c0_i32_0 = arith.constant 0 : i32
    %c0_i32_1 = arith.constant 0 : i32
    return %c0_i32, %c0_i32_0 : i32, i32
  }
  func.func @transform_6(%arg0: i32, %arg1: i32) -> (i32, i32) {
    %c0_i32 = arith.constant 0 : i32
    %c0_i32_0 = arith.constant 0 : i32
    %c0_i32_1 = arith.constant 0 : i32
    return %c0_i32, %c0_i32_0 : i32, i32
  }
  func.func @transform_7(%arg0: i32, %arg1: i32) -> (i32, i32, i32) {
    %c0_i32 = arith.constant 0 : i32
    %c0_i32_0 = arith.constant 0 : i32
    return %arg1, %arg0, %c0_i32 : i32, i32, i32
  }
}

</mosaic_0001>

<bundles_post_ra>
// kernel: tpu_custom_call.1
= control target key start
LH: loop header
LB: loop body
LE: loop exit
PB: predicated region body
PF: predicated region fallthrough
CT: control target
= control target key end

     0   :  { %s2960_s24 = smov 0   ;;  %s2962_s25 = smov 0   ;;  %s3958_s0 = inlined_call_operand.vmem [shape: f32[2,16,32], index: 0, kind: input, shape index: {}]   ;;  %s3959_s1 = inlined_call_operand.vmem [shape: f32[6,32,1], index: 1, kind: input, shape index: {}]   ;;  %s3960_s2 = inlined_call_operand.vmem [shape: f32[6,32,1], index: 2, kind: input, shape index: {}]   ;;  %s3961_s3 = inlined_call_operand.vmem [shape: f32[6,64,1], index: 3, kind: input, shape index: {}]   ;;  %s3962_s4 = inlined_call_operand.vmem [shape: f32[6,64,1], index: 4, kind: input, shape index: {}]   ;;  %s3963_s5 = inlined_call_operand.vmem [shape: f32[29,15], index: 5, kind: input, shape index: {}]   ;;  %s3964_s6 = inlined_call_operand.vmem [shape: f32[12,6], index: 6, kind: input, shape index: {}]   ;;  %s3965_s7 = inlined_call_operand.vmem [shape: f32[2,64,6], index: 7, kind: output, shape index: {}]  }
   0x1   :  { %s2964_s26 = smov 0   ;;  %s2966_s27 = smov 0  }
   0x2   :  { %s2968_s28 = smov 0  }
   0x3 LB: > { %s29_s29 = sadd.s32 1, %s2908_s27  ;;  %s2699_s30 = sadd.s32 4294967295, %s2912_s28   ;;  %s2912_s28 = sphi %s2968_s28, %s17_s28   ;;  %s2908_s27 = sphi %s2966_s27, %s3971_s27   ;;  %s2904_s26 = sphi %s2964_s26, %s3970_s26   ;;  %s2900_s25 = sphi %s2962_s25, %s3969_s25   ;;  %s2896_s24 = sphi %s2960_s24, %s3968_s24  }
   0x4   : > { %p31_p0 = scmp.ge.s32.totalorder %s29_s29, 2  ;;  %p45_p1 = scmp.ne.s32.totalorder %s2900_s25, %s2896_s24 }
   0x5   : > { %p46_p2 = scmp.eq.s32.totalorder %s2912_s28, 0  ;;  %p223_p4 = scmp.eq.s32.totalorder %s2699_s30, 1 }
   0x6   : > { %s3973_s29 = smov (%p31_p0, %s29_s29), 0  ;;  %s38_s10 = sadd.s32 1, %s2900_s25 }
   0x7   : > { %p2992_p3 = por %p46_p2, %p45_p1  ;;  %s34_s9 = ssub.s32 %s2908_s27, %s3973_s29 }
   0x8   : > { %p36_p5 = scmp.eq.s32.totalorder %s34_s9, 0  ;;  %p2999_p6 = por %p223_p4, %p45_p1 }
   0x9   : > { %p2702_p7 = scmp.ge.s32.totalorder %s2912_s28, 2 }
   0xa   : > { %s3004_s12 = scalar_select %p36_p5, %s2900_s25, %s38_s10  }
   0xb   : > { %251 = sbr.rel (%p2702_p7) target bundleno = 110 (0x6e), region = 24 }
  0x10   : > { %254 = sbr.rel (!%p2992_p3) target bundleno = 22 (0x16), region = 28  ;;  %s256_s13 = sand.u32 (%p2992_p3), 1, %s2900_s25  }
  0x11   : > { %s2704_s14 = sshll.u32 (%p2992_p3), %s2908_s27, 3  ;;  %s2703_s15 = sshll.u32 (%p2992_p3), %s256_s13, 4 }
  0x12   : > { %s263_s18 = scalar_lea.vmem (%p2992_p3), %s3958_s0, %s2704_s14  ;;  %s258_s19 = scalar_lea.vmem (%p2992_p3), [#allocation2], %s2703_s15 }
  0x13   : > { %v294_v0 = vld [vmem:[%s263_s18] sm:$0xff] (%p2992_p3)  ;;  %v296_v1 = vld [vmem:[%s263_s18 + $0x10] sm:$0xff] (%p2992_p3) }
  0x14   : > { %295 = vst [vmem:[%s258_s19] sm:$0xff] (%p2992_p3), %v294_v0 }
  0x15   : > { %297 = vst [vmem:[%s258_s19 + $0x8] sm:$0xff] %v296_v1 }
  0x16 PF: > { %303 = sbr.rel (!%p2992_p3) target bundleno = 38 (0x26), region = 66  ;;  %s305_s20 = sand.u32 (%p2992_p3), 1, %s2900_s25  }
  0x17   : > { %s2766_s21 = sshll.u32 (%p2992_p3), %s2908_s27, 4  ;;  %s2771_s22 = smul.u32 (%p2992_p3), 96, %s305_s20 }
  0x18   : > { %s310_s9 = scalar_lea.vmem (%p2992_p3), %s3959_s1, %s2766_s21 }
  0x19   : > { %v361_v2 = vld [vmem:[%s310_s9] sm:$0xff] (%p2992_p3)  ;;  %v363_v3 = vld [vmem:[%s310_s9 + $0x8] sm:$0xff] (%p2992_p3)  ;;  %s307_s10 = scalar_lea.vmem (%p2992_p3), [#allocation3], %s2771_s22 }
  0x1a   : > { %v365_v4 = vld [vmem:[%s310_s9 + $0x20] sm:$0xff] (%p2992_p3)  ;;  %362 = vst [vmem:[%s307_s10] sm:$0xff] (%p2992_p3), %v361_v2  ;;  %v367_v5 = vld [vmem:[%s310_s9 + $0x28] sm:$0xff] (%p2992_p3) }
  0x1b   : > { %364 = vst [vmem:[%s307_s10 + $0x8] sm:$0xff] %v363_v3  ;;  %v369_v6 = vld [vmem:[%s310_s9 + $0x40] sm:$0xff]  ;;  %v371_v7 = vld [vmem:[%s310_s9 + $0x48] sm:$0xff] }
  0x1c   : > { %366 = vst [vmem:[%s307_s10 + $0x10] sm:$0xff] %v365_v4  ;;  %v373_v8 = vld [vmem:[%s310_s9 + $0x60] sm:$0xff]  ;;  %v375_v9 = vld [vmem:[%s310_s9 + $0x68] sm:$0xff] }
  0x1d   : > { %368 = vst [vmem:[%s307_s10 + $0x18] sm:$0xff] %v367_v5  ;;  %v377_v10 = vld [vmem:[%s310_s9 + $0x80] sm:$0xff]  ;;  %v379_v11 = vld [vmem:[%s310_s9 + $0x88] sm:$0xff] }
  0x1e   : > { %370 = vst [vmem:[%s307_s10 + $0x20] sm:$0xff] %v369_v6  ;;  %v381_v12 = vld [vmem:[%s310_s9 + $0xa0] sm:$0xff]  ;;  %v383_v13 = vld [vmem:[%s310_s9 + $0xa8] sm:$0xff] }
  0x1f   : > { %372 = vst [vmem:[%s307_s10 + $0x28] sm:$0xff] %v371_v7 }
  0x20   : > { %374 = vst [vmem:[%s307_s10 + $0x30] sm:$0xff] %v373_v8 }
  0x21   : > { %376 = vst [vmem:[%s307_s10 + $0x38] sm:$0xff] %v375_v9 }
  0x22   : > { %378 = vst [vmem:[%s307_s10 + $0x40] sm:$0xff] %v377_v10 }
  0x23   : > { %380 = vst [vmem:[%s307_s10 + $0x48] sm:$0xff] %v379_v11 }
  0x24   : > { %382 = vst [vmem:[%s307_s10 + $0x50] sm:$0xff] %v381_v12 }
  0x25   : > { %384 = vst [vmem:[%s307_s10 + $0x58] sm:$0xff] %v383_v13 }
  0x26 PF: > { %390 = sbr.rel (!%p2992_p3) target bundleno = 54 (0x36), region = 104  ;;  %s392_s13 = sand.u32 (%p2992_p3), 1, %s2900_s25  }
  0x27   : > { %s2767_s14 = sshll.u32 (%p2992_p3), %s2908_s27, 4  ;;  %s2772_s15 = smul.u32 (%p2992_p3), 96, %s392_s13 }
  0x28   : > { %s397_s18 = scalar_lea.vmem (%p2992_p3), %s3960_s2, %s2767_s14 }
  0x29   : > { %v448_v14 = vld [vmem:[%s397_s18] sm:$0xff] (%p2992_p3)  ;;  %v450_v15 = vld [vmem:[%s397_s18 + $0x8] sm:$0xff] (%p2992_p3)  ;;  %s394_s19 = scalar_lea.vmem (%p2992_p3), [#allocation4], %s2772_s15 }
  0x2a   : > { %v452_v16 = vld [vmem:[%s397_s18 + $0x20] sm:$0xff] (%p2992_p3)  ;;  %449 = vst [vmem:[%s394_s19] sm:$0xff] (%p2992_p3), %v448_v14  ;;  %v454_v17 = vld [vmem:[%s397_s18 + $0x28] sm:$0xff] (%p2992_p3) }
  0x2b   : > { %451 = vst [vmem:[%s394_s19 + $0x8] sm:$0xff] %v450_v15  ;;  %v456_v18 = vld [vmem:[%s397_s18 + $0x40] sm:$0xff]  ;;  %v458_v19 = vld [vmem:[%s397_s18 + $0x48] sm:$0xff] }
  0x2c   : > { %453 = vst [vmem:[%s394_s19 + $0x10] sm:$0xff] %v452_v16  ;;  %v460_v20 = vld [vmem:[%s397_s18 + $0x60] sm:$0xff]  ;;  %v462_v21 = vld [vmem:[%s397_s18 + $0x68] sm:$0xff] }
  0x2d   : > { %455 = vst [vmem:[%s394_s19 + $0x18] sm:$0xff] %v454_v17  ;;  %v464_v22 = vld [vmem:[%s397_s18 + $0x80] sm:$0xff]  ;;  %v466_v23 = vld [vmem:[%s397_s18 + $0x88] sm:$0xff] }
  0x2e   : > { %457 = vst [vmem:[%s394_s19 + $0x20] sm:$0xff] %v456_v18  ;;  %v468_v24 = vld [vmem:[%s397_s18 + $0xa0] sm:$0xff]  ;;  %v470_v25 = vld [vmem:[%s397_s18 + $0xa8] sm:$0xff] }
  0x2f   : > { %459 = vst [vmem:[%s394_s19 + $0x28] sm:$0xff] %v458_v19 }
  0x30   : > { %461 = vst [vmem:[%s394_s19 + $0x30] sm:$0xff] %v460_v20 }
  0x31   : > { %463 = vst [vmem:[%s394_s19 + $0x38] sm:$0xff] %v462_v21 }
  0x32   : > { %465 = vst [vmem:[%s394_s19 + $0x40] sm:$0xff] %v464_v22 }
  0x33   : > { %467 = vst [vmem:[%s394_s19 + $0x48] sm:$0xff] %v466_v23 }
  0x34   : > { %469 = vst [vmem:[%s394_s19 + $0x50] sm:$0xff] %v468_v24 }
  0x35   : > { %471 = vst [vmem:[%s394_s19 + $0x58] sm:$0xff] %v470_v25 }
  0x36 PF: > { %477 = sbr.rel (!%p2992_p3) target bundleno = 82 (0x52), region = 142  ;;  %s479_s20 = sand.u32 (%p2992_p3), 1, %s2900_s25  }
  0x37   : > { %s2768_s21 = sshll.u32 (%p2992_p3), %s2908_s27, 5  ;;  %s2773_s22 = smul.u32 (%p2992_p3), 192, %s479_s20 }
  0x38   : > { %s3035_s9 = scalar_lea.vmem (%p2992_p3), %s3961_s3, %s2768_s21 }
  0x39   : > { %v559_v26 = vld [vmem:[%s3035_s9] sm:$0xff] (%p2992_p3)  ;;  %v561_v27 = vld [vmem:[%s3035_s9 + $0x8] sm:$0xff] (%p2992_p3)  ;;  %v563_v28 = vld [vmem:[%s3035_s9 + $0x10] sm:$0xff] (%p2992_p3)  ;;  %s3040_s10 = scalar_lea.vmem (%p2992_p3), [#allocation5], %s2773_s22 }
  0x3a   : > { %560 = vst [vmem:[%s3040_s10] sm:$0xff] (%p2992_p3), %v559_v26  ;;  %v565_v29 = vld [vmem:[%s3035_s9 + $0x18] sm:$0xff] (%p2992_p3)  ;;  %v567_v30 = vld [vmem:[%s3035_s9 + $0x40] sm:$0xff] (%p2992_p3)  ;;  %v569_v31 = vld [vmem:[%s3035_s9 + $0x48] sm:$0xff] (%p2992_p3) }
  0x3b   : > { %562 = vst [vmem:[%s3040_s10 + $0x8] sm:$0xff] %v561_v27  ;;  %v571_v32 = vld [vmem:[%s3035_s9 + $0x50] sm:$0xff]  ;;  %v573_v33 = vld [vmem:[%s3035_s9 + $0x58] sm:$0xff]  ;;  %v575_v34 = vld [vmem:[%s3035_s9 + $0x80] sm:$0xff] }
  0x3c   : > { %564 = vst [vmem:[%s3040_s10 + $0x10] sm:$0xff] %v563_v28  ;;  %v577_v35 = vld [vmem:[%s3035_s9 + $0x88] sm:$0xff]  ;;  %v579_v36 = vld [vmem:[%s3035_s9 + $0x90] sm:$0xff]  ;;  %v581_v37 = vld [vmem:[%s3035_s9 + $0x98] sm:$0xff] }
  0x3d   : > { %566 = vst [vmem:[%s3040_s10 + $0x18] sm:$0xff] %v565_v29  ;;  %v583_v38 = vld [vmem:[%s3035_s9 + $0xc0] sm:$0xff]  ;;  %v585_v39 = vld [vmem:[%s3035_s9 + $0xc8] sm:$0xff]  ;;  %v587_v40 = vld [vmem:[%s3035_s9 + $0xd0] sm:$0xff] }
  0x3e   : > { %568 = vst [vmem:[%s3040_s10 + $0x20] sm:$0xff] %v567_v30  ;;  %v589_v41 = vld [vmem:[%s3035_s9 + $0xd8] sm:$0xff]  ;;  %v591_v42 = vld [vmem:[%s3035_s9 + $0x100] sm:$0xff]  ;;  %v593_v43 = vld [vmem:[%s3035_s9 + $0x108] sm:$0xff] }
  0x3f   : > { %570 = vst [vmem:[%s3040_s10 + $0x28] sm:$0xff] %v569_v31  ;;  %v595_v44 = vld [vmem:[%s3035_s9 + $0x110] sm:$0xff]  ;;  %v597_v45 = vld [vmem:[%s3035_s9 + $0x118] sm:$0xff]  ;;  %v599_v46 = vld [vmem:[%s3035_s9 + $0x140] sm:$0xff] }
  0x40   : > { %572 = vst [vmem:[%s3040_s10 + $0x30] sm:$0xff] %v571_v32  ;;  %v601_v47 = vld [vmem:[%s3035_s9 + $0x148] sm:$0xff]  ;;  %v603_v48 = vld [vmem:[%s3035_s9 + $0x150] sm:$0xff]  ;;  %v605_v49 = vld [vmem:[%s3035_s9 + $0x158] sm:$0xff] }
  0x41   : > { %574 = vst [vmem:[%s3040_s10 + $0x38] sm:$0xff] %v573_v33 }
  0x42   : > { %576 = vst [vmem:[%s3040_s10 + $0x40] sm:$0xff] %v575_v34 }
  0x43   : > { %578 = vst [vmem:[%s3040_s10 + $0x48] sm:$0xff] %v577_v35 }
  0x44   : > { %580 = vst [vmem:[%s3040_s10 + $0x50] sm:$0xff] %v579_v36 }
  0x45   : > { %582 = vst [vmem:[%s3040_s10 + $0x58] sm:$0xff] %v581_v37 }
  0x46   : > { %584 = vst [vmem:[%s3040_s10 + $0x60] sm:$0xff] %v583_v38 }
  0x47   : > { %586 = vst [vmem:[%s3040_s10 + $0x68] sm:$0xff] %v585_v39 }
  0x48   : > { %588 = vst [vmem:[%s3040_s10 + $0x70] sm:$0xff] %v587_v40 }
  0x49   : > { %590 = vst [vmem:[%s3040_s10 + $0x78] sm:$0xff] %v589_v41 }
  0x4a   : > { %592 = vst [vmem:[%s3040_s10 + $0x80] sm:$0xff] %v591_v42 }
  0x4b   : > { %594 = vst [vmem:[%s3040_s10 + $0x88] sm:$0xff] %v593_v43 }
  0x4c   : > { %596 = vst [vmem:[%s3040_s10 + $0x90] sm:$0xff] %v595_v44 }
  0x4d   : > { %598 = vst [vmem:[%s3040_s10 + $0x98] sm:$0xff] %v597_v45 }
  0x4e   : > { %600 = vst [vmem:[%s3040_s10 + $0xa0] sm:$0xff] %v599_v46 }
  0x4f   : > { %602 = vst [vmem:[%s3040_s10 + $0xa8] sm:$0xff] %v601_v47 }
  0x50   : > { %604 = vst [vmem:[%s3040_s10 + $0xb0] sm:$0xff] %v603_v48 }
  0x51   : > { %606 = vst [vmem:[%s3040_s10 + $0xb8] sm:$0xff] %v605_v49 }
  0x52 PF: > { %612 = sbr.rel (!%p2992_p3) target bundleno = 110 (0x6e), region = 180  ;;  %s614_s13 = sand.u32 (%p2992_p3), 1, %s2900_s25  }
  0x53   : > { %s2769_s14 = sshll.u32 (%p2992_p3), %s2908_s27, 5  ;;  %s2774_s15 = smul.u32 (%p2992_p3), 192, %s614_s13 }
  0x54   : > { %s3094_s18 = scalar_lea.vmem (%p2992_p3), %s3962_s4, %s2769_s14 }
  0x55   : > { %v694_v50 = vld [vmem:[%s3094_s18] sm:$0xff] (%p2992_p3)  ;;  %v696_v51 = vld [vmem:[%s3094_s18 + $0x8] sm:$0xff] (%p2992_p3)  ;;  %v698_v52 = vld [vmem:[%s3094_s18 + $0x10] sm:$0xff] (%p2992_p3)  ;;  %s3099_s8 = scalar_lea.vmem (%p2992_p3), [#allocation6], %s2774_s15 }
  0x56   : > { %695 = vst [vmem:[%s3099_s8] sm:$0xff] (%p2992_p3), %v694_v50  ;;  %v700_v53 = vld [vmem:[%s3094_s18 + $0x18] sm:$0xff] (%p2992_p3)  ;;  %v702_v54 = vld [vmem:[%s3094_s18 + $0x40] sm:$0xff] (%p2992_p3)  ;;  %v704_v55 = vld [vmem:[%s3094_s18 + $0x48] sm:$0xff] (%p2992_p3) }
  0x57   : > { %697 = vst [vmem:[%s3099_s8 + $0x8] sm:$0xff] %v696_v51  ;;  %v706_v56 = vld [vmem:[%s3094_s18 + $0x50] sm:$0xff]  ;;  %v708_v57 = vld [vmem:[%s3094_s18 + $0x58] sm:$0xff]  ;;  %v710_v58 = vld [vmem:[%s3094_s18 + $0x80] sm:$0xff] }
  0x58   : > { %699 = vst [vmem:[%s3099_s8 + $0x10] sm:$0xff] %v698_v52  ;;  %v712_v59 = vld [vmem:[%s3094_s18 + $0x88] sm:$0xff]  ;;  %v714_v60 = vld [vmem:[%s3094_s18 + $0x90] sm:$0xff]  ;;  %v716_v61 = vld [vmem:[%s3094_s18 + $0x98] sm:$0xff] }
  0x59   : > { %701 = vst [vmem:[%s3099_s8 + $0x18] sm:$0xff] %v700_v53  ;;  %v718_v62 = vld [vmem:[%s3094_s18 + $0xc0] sm:$0xff]  ;;  %v720_v63 = vld [vmem:[%s3094_s18 + $0xc8] sm:$0xff]  ;;  %v722_v0 = vld [vmem:[%s3094_s18 + $0xd0] sm:$0xff] }
  0x5a   : > { %703 = vst [vmem:[%s3099_s8 + $0x20] sm:$0xff] %v702_v54  ;;  %v724_v1 = vld [vmem:[%s3094_s18 + $0xd8] sm:$0xff]  ;;  %v726_v2 = vld [vmem:[%s3094_s18 + $0x100] sm:$0xff]  ;;  %v728_v3 = vld [vmem:[%s3094_s18 + $0x108] sm:$0xff] }
  0x5b   : > { %705 = vst [vmem:[%s3099_s8 + $0x28] sm:$0xff] %v704_v55  ;;  %v730_v4 = vld [vmem:[%s3094_s18 + $0x110] sm:$0xff]  ;;  %v732_v5 = vld [vmem:[%s3094_s18 + $0x118] sm:$0xff]  ;;  %v734_v6 = vld [vmem:[%s3094_s18 + $0x140] sm:$0xff] }
  0x5c   : > { %707 = vst [vmem:[%s3099_s8 + $0x30] sm:$0xff] %v706_v56  ;;  %v736_v7 = vld [vmem:[%s3094_s18 + $0x148] sm:$0xff]  ;;  %v738_v8 = vld [vmem:[%s3094_s18 + $0x150] sm:$0xff]  ;;  %v740_v9 = vld [vmem:[%s3094_s18 + $0x158] sm:$0xff] }
  0x5d   : > { %709 = vst [vmem:[%s3099_s8 + $0x38] sm:$0xff] %v708_v57 }
  0x5e   : > { %711 = vst [vmem:[%s3099_s8 + $0x40] sm:$0xff] %v710_v58 }
  0x5f   : > { %713 = vst [vmem:[%s3099_s8 + $0x48] sm:$0xff] %v712_v59 }
  0x60   : > { %715 = vst [vmem:[%s3099_s8 + $0x50] sm:$0xff] %v714_v60 }
  0x61   : > { %717 = vst [vmem:[%s3099_s8 + $0x58] sm:$0xff] %v716_v61 }
  0x62   : > { %719 = vst [vmem:[%s3099_s8 + $0x60] sm:$0xff] %v718_v62 }
  0x63   : > { %721 = vst [vmem:[%s3099_s8 + $0x68] sm:$0xff] %v720_v63 }
  0x64   : > { %723 = vst [vmem:[%s3099_s8 + $0x70] sm:$0xff] %v722_v0 }
  0x65   : > { %725 = vst [vmem:[%s3099_s8 + $0x78] sm:$0xff] %v724_v1 }
  0x66   : > { %727 = vst [vmem:[%s3099_s8 + $0x80] sm:$0xff] %v726_v2 }
  0x67   : > { %729 = vst [vmem:[%s3099_s8 + $0x88] sm:$0xff] %v728_v3 }
  0x68   : > { %731 = vst [vmem:[%s3099_s8 + $0x90] sm:$0xff] %v730_v4 }
  0x69   : > { %733 = vst [vmem:[%s3099_s8 + $0x98] sm:$0xff] %v732_v5 }
  0x6a   : > { %735 = vst [vmem:[%s3099_s8 + $0xa0] sm:$0xff] %v734_v6 }
  0x6b   : > { %737 = vst [vmem:[%s3099_s8 + $0xa8] sm:$0xff] %v736_v7 }
  0x6c   : > { %739 = vst [vmem:[%s3099_s8 + $0xb0] sm:$0xff] %v738_v8 }
  0x6d   : > { %741 = vst [vmem:[%s3099_s8 + $0xb8] sm:$0xff] %v740_v9 }
  0x6e PF: > { %p2713_p8 = scmp.ge.s32.totalorder %s2912_s28, 1  ;;  %p746_p9 = scmp.lt.s32.totalorder %s2912_s28, 3 }
  0x70   : > { %p747_p10 = pnand %p2713_p8, %p746_p9 }
  0x71   : > { %s3149_s19 = sand.u32 (!%p747_p10), 1, %s2896_s24   ;;  %s2915_s23 = smov (!%p747_p10), 2  }
  0x72   : > { %750 = sbr.rel (%p747_p10) target bundleno = 1802 (0x70a), region = 218  ;;  %s2714_s20 = sshll.u32 (!%p747_p10), %s3149_s19, 4 }
  0x73   : > { %s2775_s21 = smul.u32 (!%p747_p10), 96, %s3149_s19  ;;  %s755_s22 = scalar_lea.vmem (!%p747_p10), [#allocation2], %s2714_s20 }
  0x74   : > { %s2916_s24 = smov (!%p747_p10), 127   ;;  %s2917_s9 = smov (!%p747_p10), 126  }
  0x75   : > { %s762_s30 = scalar_lea.vmem (!%p747_p10), [#allocation3], %s2775_s21  ;;  %s2918_s10 = smov (!%p747_p10), 125  }
  0x76   : > { %s2919_s13 = smov (!%p747_p10), 124   ;;  %s3198_s14 = scalar_lea.vmem (!%p747_p10), [#allocation4], %s2775_s21 }
  0x77   : > { %v2914_v10 = vmov 0   ;;  %v912_v11 = vld [vmem:[%s755_s22] sm:$0xff]  ;;  %v835_v12 = vld [vmem:[%s762_s30 + $0x8] sm:$0xff]  ;;  %v837_v13 = vld [vmem:[%s762_s30 + $0x18] sm:$0xff]  ;;  %vm917_vm0 = vcmask 15360   ;;  %vm919_vm1 = vcmask 277504  }
  0x78   : > { %2824 = vset.pattern.permute.xlu1 %v2914_v10  ;;  %2823 = vset.pattern.permute.xlu0 %v2914_v10  ;;  %v834_v14 = vld [vmem:[%s762_s30] sm:$0xff]  ;;  %v836_v15 = vld [vmem:[%s762_s30 + $0x10] sm:$0xff]  ;;  %v839_v17 = vld [vmem:[%s762_s30 + $0x28] sm:$0xff]  ;;  %s2776_s15 = smul.u32 192, %s3149_s19  ;;  %vm1078_vm6 = vcmask 1044480   ;;  %vm1071_vm7 = vcmask 236544  }
  0x79   : > { %2825 = vset.pattern.permute.xlu2 %v2914_v10  ;;  %914 = vrot.lane.b32.xlu0 %v912_v11, %s2915_s23  ;;  %v838_v16 = vld [vmem:[%s762_s30 + $0x20] sm:$0xff]  ;;  %v841_v18 = vld [vmem:[%s762_s30 + $0x38] sm:$0xff]  ;;  %v843_v19 = vld [vmem:[%s762_s30 + $0x48] sm:$0xff]  ;;  %vm1115_vm8 = vcmask 138240  }
  0x7a   : > { %928 = vperm.xlu1 %2824, %v835_v12   ;;  %940 = vperm.xlu2 %2825, %v837_v13   ;;  %v840_v20 = vld [vmem:[%s762_s30 + $0x30] sm:$0xff]  ;;  %v842_v21 = vld [vmem:[%s762_s30 + $0x40] sm:$0xff]  ;;  %v2736_v22 = vld [vmem:[%s755_s22 + $0x8] sm:$0xff]  ;;  %s3263_s16 = scalar_lea.vmem [#allocation5], %s2776_s15  ;;  %s3654_s20 = scalar_lea.vmem [#allocation6], %s2776_s15 }
  0x7b   : > { %v845_v23 = vld [vmem:[%s762_s30 + $0x58] sm:$0xff]  ;;  %v844_v24 = vld [vmem:[%s762_s30 + $0x50] sm:$0xff]  ;;  %v847_v55 = vld [vmem:[%s3198_s14 + $0x8] sm:$0xff] }
  0x7c   : > { %v846_v58 = vld [vmem:[%s3198_s14] sm:$0xff]  ;;  %v848_v59 = vld [vmem:[%s3198_s14 + $0x10] sm:$0xff]  ;;  %v849_v60 = vld [vmem:[%s3198_s14 + $0x18] sm:$0xff] }
  0x7d   : > { %v850_v61 = vld [vmem:[%s3198_s14 + $0x20] sm:$0xff] }
  0x81   : > { %923 = vperm.xlu0 %2823, %v834_v14  }
  0x82   : > { %935 = vperm.xlu1 %2824, %v836_v15   ;;  %957 = vperm.xlu2 %2825, %v838_v16  }
  0x89   : > { %962 = vperm.xlu0 %2823, %v839_v17  }
  0x8a   : > { %984 = vperm.xlu1 %2824, %v841_v18   ;;  %1006 = vperm.xlu2 %2825, %v843_v19  }
  0x91   : > { %979 = vperm.xlu0 %2823, %v840_v20  }
  0x92   : > { %1001 = vperm.xlu1 %2824, %v842_v21  }
  0x99   : > { %1887 = vrot.lane.b32.xlu0 %v2736_v22, %s2915_s23 }
  0x9a   : > { %1028 = vperm.xlu1 %2824, %v845_v23  }
  0xa1   : > { %1023 = vperm.xlu0 %2823, %v844_v24  }
  0xd4   : > { %v941_v25 = vpop.permute.xlu2 %940 }
  0xdc   : > { %v958_v33 = vpop.permute.xlu2 %957 }
  0xe4   : > { %v1007_v44 = vpop.permute.xlu2 %1006 }
  0xeb   : > { %v915_v26 = vpop.permute.xlu0 %914 }
  0xec   : > { %v918_v27 = vsel %vm917_vm0, 0.0, %v915_v26  ;;  %v3158_v28 = vpop.permute.xlu1 %928 }
  0xed   : > { %v3161_v29 = vsel %vm919_vm1, %v918_v27, 0.0 }
  0xee   : > { %v944_v30 = vmul.f32 %v941_v25, %v3161_v29  ;;  %v965_v35 = vmul.f32 %v958_v33, %v3161_v29  ;;  %v1010_v47 = vmul.f32 %v1007_v44, %v3161_v29  ;;  %v932_v4 = vmul.f32 %v3158_v28, %v3161_v29 }
  0xf0   : > { %949 = vrot.lane.b32.xlu1 %v944_v30, %s2916_s24 }
  0xf3   : > { %v3165_v31 = vpop.permute.xlu0 %923 }
  0xf4   : > { %v936_v32 = vpop.permute.xlu1 %935  ;;  %v931_v6 = vmul.f32 %v3165_v31, %v3161_v29 }
  0xf5   : > { %v943_v34 = vmul.f32 %v936_v32, %v3161_v29 }
  0xf7   : > { %947 = vrot.lane.b32.xlu2 %v943_v34, %s2916_s24 }
  0xf8   : > { %969 = vrot.lane.b32.xlu1 %v965_v35, %s2917_s9 }
  0xfb   : > { %v963_v36 = vpop.permute.xlu0 %962 }
  0xfc   : > { %v966_v37 = vmul.f32 %v963_v36, %v3161_v29  ;;  %v985_v38 = vpop.permute.xlu1 %984 }
  0xfd   : > { %v988_v39 = vmul.f32 %v985_v38, %v3161_v29 }
  0xff   : > { %993 = vrot.lane.b32.xlu0 %v988_v39, %s2918_s10  ;;  %971 = vrot.lane.b32.xlu2 %v966_v37, %s2917_s9 }
 0x103   : > { %v980_v40 = vpop.permute.xlu0 %979 }
 0x104   : > { %v987_v41 = vmul.f32 %v980_v40, %v3161_v29  ;;  %v1002_v42 = vpop.permute.xlu1 %1001 }
 0x105   : > { %v1009_v43 = vmul.f32 %v1002_v42, %v3161_v29 }
 0x107   : > { %1013 = vrot.lane.b32.xlu1 %v1009_v43, %s2919_s13  ;;  %991 = vrot.lane.b32.xlu2 %v987_v41, %s2918_s10 }
 0x10b   : > { %v1888_v45 = vpop.permute.xlu0 %1887 }
 0x10c   : > { %v1890_v46 = vsel %vm917_vm0, 0.0, %v1888_v45  ;;  %v3210_v0 = vpop.permute.xlu1 %1028 }
 0x10d   : > { %v3182_v48 = vsel %vm919_vm1, %v1890_v46, 0.0 }
 0x10e   : > { %v1918_v49 = vmul.f32 %v3182_v48, %v980_v40  ;;  %v1906_v50 = vmul.f32 %v3182_v48, %v958_v33  ;;  %v1894_v51 = vmul.f32 %v3182_v48, %v936_v32  ;;  %v1907_v52 = vmul.f32 %v3182_v48, %v963_v36 }
 0x10f   : > { %1015 = vrot.lane.b32.xlu2 %v1010_v47, %s2919_s13  ;;  %v1895_v53 = vmul.f32 %v3182_v48, %v941_v25  ;;  %v1930_v54 = vmul.f32 %v3182_v48, %v1002_v42  ;;  %v1931_v56 = vmul.f32 %v3182_v48, %v1007_v44  ;;  %v1919_v57 = vmul.f32 %v3182_v48, %v985_v38 }
 0x110   : > { %1922 = vrot.lane.b32.xlu1 %v1918_v49, %s2918_s10  ;;  %1910 = vrot.lane.b32.xlu0 %v1906_v50, %s2917_s9  ;;  %v1892_v23 = vmul.f32 %v3182_v48, %v3165_v31  ;;  %v1893_v39 = vmul.f32 %v3182_v48, %v3158_v28 }
 0x113   : > { %v1024_v3 = vpop.permute.xlu0 %1023 }
 0x117   : > { %1898 = vrot.lane.b32.xlu2 %v1894_v51, %s2916_s24 }
 0x118   : > { %1912 = vrot.lane.b32.xlu1 %v1907_v52, %s2917_s9  ;;  %1900 = vrot.lane.b32.xlu0 %v1895_v53, %s2916_s24 }
 0x11f   : > { %1934 = vrot.lane.b32.xlu2 %v1930_v54, %s2919_s13 }
 0x120   : > { %1125 = vperm.xlu1 %2824, %v847_v55   ;;  %1936 = vrot.lane.b32.xlu0 %v1931_v56, %s2919_s13 }
 0x127   : > { %1924 = vrot.lane.b32.xlu2 %v1919_v57, %s2918_s10 }
 0x128   : > { %1120 = vperm.xlu0 %2823, %v846_v58  }
 0x12f   : > { %1132 = vperm.xlu2 %2825, %v848_v59  }
 0x130   : > { %1137 = vperm.xlu0 %2823, %v849_v60   ;;  %v855_v60 = vld [vmem:[%s3198_s14 + $0x48] sm:$0xff] }
 0x138   : > { %1154 = vperm.xlu0 %2823, %v850_v61   ;;  %v853_v61 = vld [vmem:[%s3198_s14 + $0x38] sm:$0xff] }
 0x151   : > { %v948_v62 = vpop.permute.xlu2 %947 }
 0x152   : > { %v953_v10 = vadd.f32 %v948_v62, %v931_v6  ;;  %v851_v62 = vld [vmem:[%s3198_s14 + $0x28] sm:$0xff]  ;;  %v862_v6 = vld [vmem:[%s3263_s16 + $0x20] sm:$0xff] }
 0x159   : > { %v972_v63 = vpop.permute.xlu2 %971 }
 0x161   : > { %v992_v2 = vpop.permute.xlu2 %991 }
 0x162   : > { %v950_v1 = vpop.permute.xlu1 %949 }
 0x163   : > { %v954_v5 = vadd.f32 %v950_v1, %v932_v4  ;;  %v852_v1 = vld [vmem:[%s3198_s14 + $0x30] sm:$0xff]  ;;  %v857_v4 = vld [vmem:[%s3198_s14 + $0x58] sm:$0xff] }
 0x165   : > { %v976_v7 = vadd.f32 %v972_v63, %v954_v5  ;;  %v856_v63 = vld [vmem:[%s3198_s14 + $0x50] sm:$0xff]  ;;  %v863_v5 = vld [vmem:[%s3263_s16 + $0x28] sm:$0xff] }
 0x169   : > { %v1016_v11 = vpop.permute.xlu2 %1015 }
 0x16a   : > { %v970_v8 = vpop.permute.xlu1 %969 }
 0x16b   : > { %v975_v13 = vadd.f32 %v970_v8, %v953_v10  ;;  %v868_v8 = vld [vmem:[%s3263_s16 + $0x50] sm:$0xff]  ;;  %v861_v10 = vld [vmem:[%s3263_s16 + $0x18] sm:$0xff] }
 0x16d   : > { %v997_v17 = vadd.f32 %v992_v2, %v975_v13  ;;  %v860_v2 = vld [vmem:[%s3263_s16 + $0x10] sm:$0xff] }
 0x16e   : > { %v864_v13 = vld [vmem:[%s3263_s16 + $0x30] sm:$0xff] }
 0x171   : > { %v994_v9 = vpop.permute.xlu0 %993  ;;  %v1899_v20 = vpop.permute.xlu2 %1898 }
 0x172   : > { %v998_v12 = vadd.f32 %v994_v9, %v976_v7  ;;  %v1904_v25 = vadd.f32 %v1899_v20, %v1892_v23  ;;  %v858_v7 = vld [vmem:[%s3263_s16] sm:$0xff]  ;;  %v865_v9 = vld [vmem:[%s3263_s16 + $0x38] sm:$0xff] }
 0x173   : > { %v906_v20 = vld [vmem:[%s3963_s5] sm:$0xff] }
 0x174   : > { %v1020_v14 = vadd.f32 %v1016_v11, %v998_v12  ;;  %v871_v11 = vld [vmem:[%s3263_s16 + $0x68] sm:$0xff] }
 0x175   : > { %v867_v12 = vld [vmem:[%s3263_s16 + $0x48] sm:$0xff] }
 0x176   : > { %v1032_v15 = vadd.f32 %v3210_v0, %v1020_v14  ;;  %v909_v14 = vld [vmem:[%s3963_s5 + $0x18] sm:$0x1f] }
 0x177   : > { %2718 = vmatpush.msk.msra.mxu0 %vm1078_vm6, %v909_v14  ;;  %2739 = vmatpush.msk.msra.mxu2 %vm1078_vm6, %v909_v14  ;;  %vm1569_vm6 = vcmask 1043456  }
 0x178   : > { %v1037_v16 = vmul.f32 1.442695, %v1032_v15  ;;  %vm1034_vm2 = vcmp.gt.f32.partialorder %v1032_v15, 0.0 }
 0x179   : > { %v1014_v18 = vpop.permute.xlu1 %1013  ;;  %v1935_v36 = vpop.permute.xlu2 %1934 }
 0x17a   : > { %v1019_v19 = vadd.f32 %v1014_v18, %v997_v17  ;;  %2826 = vpow2.f32 %v1037_v16  ;;  %v870_v16 = vld [vmem:[%s3263_s16 + $0x60] sm:$0xff] }
 0x17b   : > { %v866_v17 = vld [vmem:[%s3263_s16 + $0x40] sm:$0xff] }
 0x17c   : > { %v1031_v21 = vadd.f32 %v1024_v3, %v1019_v19  ;;  %v907_v19 = vld [vmem:[%s3963_s5 + $0x8] sm:$0xff] }
 0x17e   : > { %v1035_v22 = vmul.f32 1.442695, %v1031_v21  ;;  %vm1033_vm3 = vcmp.gt.f32.partialorder %v1031_v21, 0.0 }
 0x180   : > { %v2827_v24 = vpop.eup %2826  ;;  %2828 = vpow2.f32 %v1035_v22 }
 0x181   : > { %v2717_v26 = vadd.f32 -1.0, %v2827_v24  ;;  %v1925_v28 = vpop.permute.xlu2 %1924 }
 0x182   : > { %v1923_v27 = vpop.permute.xlu1 %1922  ;;  %v1911_v29 = vpop.permute.xlu0 %1910 }
 0x183   : > { %v1916_v30 = vadd.f32 %v1911_v29, %v1904_v25  ;;  %v1042_v32 = vmul.f32 0.1, %v2717_v26 }
 0x185   : > { %v1928_v33 = vadd.f32 %v1923_v27, %v1916_v30  ;;  %v3219_v34 = vsel %vm1034_vm2, %v1032_v15, %v1042_v32  ;;  %v908_v15 = vld [vmem:[%s3963_s5 + $0x10] sm:$0xff] }
 0x186   : > { %v2829_v35 = vpop.eup %2828  ;;  %1049 = vrot.lane.b32.xlu0 %v3219_v34, %s2916_s24  ;;  %1095 = vmatpush.msra.mxu0 %v908_v15 }
 0x187   : > { %v1940_v37 = vadd.f32 %v1935_v36, %v1928_v33  ;;  %v2716_v38 = vadd.f32 -1.0, %v2829_v35  ;;  %2001 = vmatpush.msra.mxu2 %v908_v15 }
 0x188   : > { %1096 = vmatpush.msra.mxu0 %v907_v19 }
 0x189   : > { %v1942_v31 = vadd.f32 %v1940_v37, %v1024_v3  ;;  %v1041_v40 = vmul.f32 0.1, %v2716_v38  ;;  %v859_v3 = vld [vmem:[%s3263_s16 + $0x8] sm:$0xff]  ;;  %2002 = vmatpush.msra.mxu2 %v907_v19  ;;  %v3298_v24 = vpop.permute.xlu2 %1132 }
 0x18a   : > { %v1901_v41 = vpop.permute.xlu0 %1900  ;;  %v1913_v45 = vpop.permute.xlu1 %1912  ;;  %1097 = vmatpush.msra.mxu0 %v906_v20 }
 0x18b   : > { %v1905_v42 = vadd.f32 %v1901_v41, %v1893_v39  ;;  %v3225_v43 = vsel %vm1033_vm3, %v1031_v21, %v1041_v40  ;;  %v1946_v44 = vmul.f32 1.442695, %v1942_v31  ;;  %vm1944_vm4 = vcmp.gt.f32.partialorder %v1942_v31, 0.0  ;;  %2003 = vmatpush.msra.mxu2 %v906_v20  ;;  %v869_v21 = vld [vmem:[%s3263_s16 + $0x58] sm:$0xff] }
 0x18c   : > { %1055 = vrot.lane.b32.xlu1 %v3225_v43, %s2917_s9  ;;  %1047 = vrot.lane.b32.xlu2 %v3225_v43, %s2916_s24 }
 0x18d   : > { %v1917_v46 = vadd.f32 %v1913_v45, %v1905_v42  ;;  %2830 = vpow2.f32 %v1946_v44 }
 0x18e   : > { %1063 = vrot.lane.b32.xlu0 %v3225_v43, %s2918_s10 }
 0x18f   : > { %v1929_v47 = vadd.f32 %v1925_v28, %v1917_v46 }
 0x192   : > { %v1937_v48 = vpop.permute.xlu0 %1936  ;;  %v3300_v25 = vpop.permute.xlu1 %1125 }
 0x193   : > { %v2831_v49 = vpop.eup %2830  ;;  %v1941_v50 = vadd.f32 %v1937_v48, %v1929_v47 }
 0x194   : > { %1065 = vrot.lane.b32.xlu1 %v3219_v34, %s2918_s10  ;;  %1057 = vrot.lane.b32.xlu2 %v3219_v34, %s2917_s9  ;;  %v2737_v51 = vadd.f32 -1.0, %v2831_v49 }
 0x195   : > { %v1943_v52 = vadd.f32 %v1941_v50, %v3210_v0  ;;  %v854_v0 = vld [vmem:[%s3198_s14 + $0x40] sm:$0xff] }
 0x196   : > { %v1952_v53 = vmul.f32 0.1, %v2737_v51 }
 0x197   : > { %v1948_v54 = vmul.f32 1.442695, %v1943_v52  ;;  %vm1945_vm5 = vcmp.gt.f32.partialorder %v1943_v52, 0.0 }
 0x198   : > { %v3238_v55 = vsel %vm1944_vm4, %v1942_v31, %v1952_v53 }
 0x199   : > { %2832 = vpow2.f32 %v1948_v54  ;;  %1974 = vrot.lane.b32.xlu0 %v3238_v55, %s2918_s10 }
 0x19a   : > { %v3285_v18 = vpop.permute.xlu0 %1120 }
 0x19c   : > { %1966 = vrot.lane.b32.xlu2 %v3238_v55, %s2917_s9  ;;  %1958 = vrot.lane.b32.xlu1 %v3238_v55, %s2916_s24 }
 0x19f   : > { %v2833_v56 = vpop.eup %2832 }
 0x1a0   : > { %v2738_v57 = vadd.f32 -1.0, %v2833_v56  ;;  %v872_v56 = vld [vmem:[%s3263_s16 + $0x70] sm:$0xff] }
 0x1a2   : > { %v1953_v58 = vmul.f32 0.1, %v2738_v57  ;;  %v3294_v22 = vpop.permute.xlu0 %1137 }
 0x1a4   : > { %v3246_v59 = vsel %vm1945_vm5, %v1943_v52, %v1953_v58  ;;  %v873_v52 = vld [vmem:[%s3263_s16 + $0x78] sm:$0xff] }
 0x1a5   : > { %1976 = vrot.lane.b32.xlu0 %v3246_v59, %s2918_s10  ;;  %1968 = vrot.lane.b32.xlu2 %v3246_v59, %s2917_s9 }
 0x1a6   : > { %1960 = vrot.lane.b32.xlu1 %v3246_v59, %s2916_s24 }
 0x1aa   : > { %v3296_v23 = vpop.permute.xlu0 %1154 }
 0x1ad   : > { %1203 = vperm.xlu0 %2823, %v855_v60   ;;  %1181 = vperm.xlu2 %2825, %v853_v61  }
 0x1ae   : > { %1159 = vperm.xlu1 %2824, %v851_v62  }
 0x1b5   : > { %1220 = vperm.xlu0 %2823, %v856_v63   ;;  %1198 = vperm.xlu2 %2825, %v854_v0  }
 0x1b6   : > { %1176 = vperm.xlu1 %2824, %v852_v1  }
 0x1bd   : > { %1268 = vperm.xlu0 %2823, %v860_v2   ;;  %1263 = vperm.xlu2 %2825, %v859_v3  }
 0x1be   : > { %1225 = vperm.xlu1 %2824, %v857_v4  }
 0x1c5   : > { %1287 = vperm.xlu0 %2823, %v863_v5   ;;  %1282 = vperm.xlu2 %2825, %v862_v6  }
 0x1c6   : > { %1258 = vperm.xlu1 %2824, %v858_v7  }
 0x1cd   : > { %1336 = vperm.xlu0 %2823, %v868_v8   ;;  %1297 = vperm.xlu2 %2825, %v865_v9  }
 0x1ce   : > { %1273 = vperm.xlu1 %2824, %v861_v10  }
 0x1d5   : > { %1375 = vperm.xlu0 %2823, %v871_v11   ;;  %1331 = vperm.xlu2 %2825, %v867_v12  }
 0x1d6   : > { %1292 = vperm.xlu1 %2824, %v864_v13  }
 0x1dd   : > { %1370 = vperm.xlu2 %2825, %v870_v16  }
 0x1de   : > { %1326 = vperm.xlu1 %2824, %v866_v17  }
 0x1e6   : > { %1341 = vperm.xlu1 %2824, %v869_v21   ;;  %v1048_v27 = vpop.permute.xlu2 %1047 }
 0x1e7   : > { %v1053_v29 = vadd.f32 %v1048_v27, %v3225_v43 }
 0x1ee   : > { %v1058_v37 = vpop.permute.xlu2 %1057 }
 0x1f6   : > { %v1967_v42 = vpop.permute.xlu2 %1966 }
 0x1f8   : > { %v1050_v26 = vpop.permute.xlu0 %1049 }
 0x1f9   : > { %v1054_v36 = vadd.f32 %v1050_v26, %v3219_v34 }
 0x1fb   : > { %v1062_v31 = vadd.f32 %v1058_v37, %v1054_v36 }
 0x1fe   : > { %v1056_v30 = vpop.permute.xlu1 %1055 }
 0x1ff   : > { %v1061_v32 = vadd.f32 %v1056_v30, %v1053_v29  ;;  %v1969_v28 = vpop.permute.xlu2 %1968 }
 0x200   : > { %v1064_v33 = vpop.permute.xlu0 %1063 }
 0x201   : > { %v1069_v35 = vadd.f32 %v1064_v33, %v1061_v32 }
 0x203   : > { %2719 = vmatmul.msk.f32.vlgmr.msra.gmra.mxu0 %vm1071_vm7, %v1069_v35 }
 0x206   : > { %v1066_v38 = vpop.permute.xlu1 %1065 }
 0x207   : > { %v1070_v39 = vadd.f32 %v1066_v38, %v1062_v31  ;;  %v1182_v60 = vpop.permute.xlu2 %1181  ;;  %v874_v31 = vld [vmem:[%s3263_s16 + $0x80] sm:$0xff] }
 0x20b   : > { %2720 = vmatmul.msk.f32.gmra.mxu0 %vm1071_vm7, %v1070_v39  ;;  %v1975_v44 = vpop.permute.xlu0 %1974  ;;  %v875_v39 = vld [vmem:[%s3263_s16 + $0x88] sm:$0xff] }
 0x20e   : > { %v1959_v40 = vpop.permute.xlu1 %1958 }
 0x20f   : > { %v1964_v41 = vadd.f32 %v1959_v40, %v3238_v55  ;;  %v1199_v62 = vpop.permute.xlu2 %1198 }
 0x211   : > { %v1972_v43 = vadd.f32 %v1967_v42, %v1964_v41 }
 0x213   : > { %v1980_v45 = vadd.f32 %v1975_v44, %v1972_v43  ;;  %v876_v43 = vld [vmem:[%s3263_s16 + $0x90] sm:$0xff]  ;;  %v877_v44 = vld [vmem:[%s3263_s16 + $0x98] sm:$0xff] }
 0x215   : > { %2740 = vmatmul.msk.f32.vlgmr.msra.gmra.mxu2 %vm1071_vm7, %v1980_v45  ;;  %v879_v45 = vld [vmem:[%s3263_s16 + $0xa8] sm:$0xff] }
 0x217   : > { %v1977_v48 = vpop.permute.xlu0 %1976  ;;  %v3336_v0 = vpop.permute.xlu2 %1263 }
 0x218   : > { %v1961_v46 = vpop.permute.xlu1 %1960 }
 0x219   : > { %v1965_v34 = vadd.f32 %v1961_v46, %v3246_v59  ;;  %v878_v46 = vld [vmem:[%s3263_s16 + $0xa0] sm:$0xff] }
 0x21b   : > { %v1973_v47 = vadd.f32 %v1969_v28, %v1965_v34  ;;  %v880_v28 = vld [vmem:[%s3263_s16 + $0xb0] sm:$0xff] }
 0x21d   : > { %v1981_v49 = vadd.f32 %v1977_v48, %v1973_v47 }
 0x21f   : > { %2741 = vmatmul.msk.f32.gmra.mxu2 %vm1071_vm7, %v1981_v49  ;;  %v3340_v2 = vpop.permute.xlu2 %1282  ;;  %v1204_v38 = vpop.permute.xlu0 %1203  ;;  %vm1556_vm7 = vcmask 97280  }
 0x220   : > { %v1160_v55 = vpop.permute.xlu1 %1159 }
 0x227   : > { %v3344_v4 = vpop.permute.xlu2 %1297  ;;  %v1221_v34 = vpop.permute.xlu0 %1220 }
 0x228   : > { %v1177_v57 = vpop.permute.xlu1 %1176 }
 0x22f   : > { %v3358_v11 = vpop.permute.xlu2 %1331  ;;  %v3412_v47 = vpop.permute.xlu0 %1268 }
 0x230   : > { %v3328_v58 = vpop.permute.xlu1 %1225 }
 0x237   : > { %v3362_v13 = vpop.permute.xlu2 %1370  ;;  %v3414_v48 = vpop.permute.xlu0 %1287 }
 0x238   : > { %v3330_v59 = vpop.permute.xlu1 %1258 }
 0x23f   : > { %v3416_v49 = vpop.permute.xlu0 %1336 }
 0x240   : > { %v3332_v61 = vpop.permute.xlu1 %1273 }
 0x248   : > { %v3334_v63 = vpop.permute.xlu1 %1292 }
 0x250   : > { %v3338_v1 = vpop.permute.xlu1 %1326 }
 0x258   : > { %v3342_v3 = vpop.permute.xlu1 %1341 }
 0x280   : > { %v3310_v50 = vpop.f32.mrf.mxu0 }
 0x281   : > { %1107 = vrot.lane.b32.xlu1 %v3310_v50, %s2915_s23 }
 0x288   : > { %v3314_v51 = vpop.f32.mrf.mxu0 }
 0x289   : > { %1109 = vrot.lane.b32.xlu2 %v3314_v51, %s2915_s23 }
 0x291   : > { %1385 = vperm.xlu2 %2825, %v873_v52  }
 0x298   : > { %v3319_v53 = vpop.f32.mrf.mxu2 }
 0x299   : > { %2013 = vrot.lane.b32.xlu1 %v3319_v53, %s2915_s23 }
 0x2a2   : > { %v3323_v54 = vpop.f32.mrf.mxu2 }
 0x2a3   : > { %2015 = vrot.lane.b32.xlu1 %v3323_v54, %s2915_s23 }
 0x2ab   : > { %1380 = vperm.xlu1 %2824, %v872_v56  }
 0x2e3   : > { %v1110_v16 = vpop.permute.xlu2 %1109 }
 0x2e4   : > { %v1114_v26 = vsel %vm917_vm0, 0.0, %v1110_v16 }
 0x2e5   : > { %v3378_v27 = vsel %vm1115_vm8, %v1114_v26, 0.0 }
 0x2e6   : > { %v1185_v30 = vmul.f32 %v1182_v60, %v3378_v27  ;;  %v1141_v35 = vmul.f32 %v3294_v22, %v3378_v27  ;;  %v1207_v40 = vmul.f32 %v1204_v38, %v3378_v27 }
 0x2eb   : > { %v3418_v52 = vpop.permute.xlu2 %1385 }
 0x2f3   : > { %v1108_v5 = vpop.permute.xlu1 %1107 }
 0x2f4   : > { %v1113_v6 = vsel %vm917_vm0, 0.0, %v1108_v5 }
 0x2f5   : > { %v3348_v7 = vsel %vm1115_vm8, %v1113_v6, 0.0 }
 0x2f6   : > { %v1184_v8 = vmul.f32 %v1177_v57, %v3348_v7  ;;  %v1162_v9 = vmul.f32 %v3296_v23, %v3348_v7  ;;  %v1140_v10 = vmul.f32 %v3298_v24, %v3348_v7  ;;  %v1206_v12 = vmul.f32 %v1199_v62, %v3348_v7 }
 0x2f8   : > { %1188 = vrot.lane.b32.xlu0 %v1184_v8, %s2918_s10  ;;  %1166 = vrot.lane.b32.xlu2 %v1162_v9, %s2917_s9 }
 0x2f9   : > { %1144 = vrot.lane.b32.xlu1 %v1140_v10, %s2916_s24 }
 0x301   : > { %1210 = vrot.lane.b32.xlu1 %v1206_v12, %s2919_s13 }
 0x30b   : > { %v2014_v14 = vpop.permute.xlu1 %2013 }
 0x30c   : > { %v2019_v15 = vsel %vm917_vm0, 0.0, %v2014_v14 }
 0x30d   : > { %v3366_v17 = vsel %vm1115_vm8, %v2019_v15, 0.0 }
 0x30e   : > { %v2037_v19 = vmul.f32 %v3366_v17, %v3296_v23  ;;  %v2025_v20 = vmul.f32 %v3366_v17, %v3298_v24  ;;  %v2049_v21 = vmul.f32 %v3366_v17, %v1177_v57  ;;  %v1163_v23 = vmul.f32 %v1160_v55, %v3378_v27  ;;  %v3422_v57 = vpop.permute.xlu0 %1375 }
 0x30f   : > { %v2061_v24 = vmul.f32 %v3366_v17, %v1199_v62 }
 0x310   : > { %2041 = vrot.lane.b32.xlu0 %v2037_v19, %s2917_s9  ;;  %2029 = vrot.lane.b32.xlu2 %v2025_v20, %s2916_s24  ;;  %v2023_v20 = vmul.f32 %v3366_v17, %v3285_v18 }
 0x311   : > { %2053 = vrot.lane.b32.xlu1 %v2049_v21, %s2918_s10 }
 0x315   : > { %v2016_v29 = vpop.permute.xlu1 %2015 }
 0x316   : > { %v2020_v32 = vsel %vm917_vm0, 0.0, %v2016_v29 }
 0x317   : > { %v3388_v33 = vsel %vm1115_vm8, %v2020_v32, 0.0 }
 0x318   : > { %1168 = vrot.lane.b32.xlu0 %v1163_v23, %s2917_s9  ;;  %2065 = vrot.lane.b32.xlu2 %v2061_v24, %s2919_s13  ;;  %v2026_v36 = vmul.f32 %v3388_v33, %v3294_v22  ;;  %v2038_v37 = vmul.f32 %v3388_v33, %v1160_v55  ;;  %v881_v22 = vld [vmem:[%s3263_s16 + $0xb8] sm:$0xff]  ;;  %v2050_v41 = vmul.f32 %v3388_v33, %v1182_v60 }
 0x319   : > { %1190 = vrot.lane.b32.xlu1 %v1185_v30, %s2918_s10  ;;  %v2062_v42 = vmul.f32 %v3388_v33, %v1204_v38  ;;  %v1128_v60 = vmul.f32 %v3285_v18, %v3348_v7  ;;  %v1129_v38 = vmul.f32 %v3300_v25, %v3378_v27 }
 0x31d   : > { %v3420_v55 = vpop.permute.xlu1 %1380 }
 0x320   : > { %1146 = vrot.lane.b32.xlu2 %v1141_v35, %s2916_s24  ;;  %2031 = vrot.lane.b32.xlu0 %v2026_v36, %s2916_s24 }
 0x321   : > { %2043 = vrot.lane.b32.xlu1 %v2038_v37, %s2917_s9 }
 0x328   : > { %1414 = vperm.xlu0 %2823, %v874_v31   ;;  %1212 = vrot.lane.b32.xlu2 %v1207_v40, %s2919_s13 }
 0x329   : > { %1419 = vperm.xlu1 %2824, %v875_v39  }
 0x330   : > { %2055 = vrot.lane.b32.xlu2 %v2050_v41, %s2918_s10  ;;  %2067 = vrot.lane.b32.xlu0 %v2062_v42, %s2919_s13 }
 0x331   : > { %1473 = vperm.xlu1 %2824, %v881_v22  }
 0x338   : > { %1424 = vperm.xlu2 %2825, %v876_v43   ;;  %1429 = vperm.xlu0 %2823, %v877_v44  }
 0x340   : > { %1463 = vperm.xlu2 %2825, %v879_v45   ;;  %1458 = vperm.xlu0 %2823, %v878_v46  }
 0x348   : > { %1468 = vperm.xlu0 %2823, %v880_v28  }
 0x352   : > { %v1167_v56 = vpop.permute.xlu2 %1166 }
 0x36a   : > { %v2030_v8 = vpop.permute.xlu2 %2029  ;;  %v1189_v9 = vpop.permute.xlu0 %1188 }
 0x36b   : > { %v1145_v62 = vpop.permute.xlu1 %1144  ;;  %v2035_v26 = vadd.f32 %v2030_v8, %v2023_v20 }
 0x36c   : > { %v1150_v5 = vadd.f32 %v1145_v62, %v1128_v60  ;;  %v2024_v60 = vmul.f32 %v3388_v33, %v3300_v25 }
 0x36e   : > { %v1172_v6 = vadd.f32 %v1167_v56, %v1150_v5 }
 0x370   : > { %v1194_v10 = vadd.f32 %v1189_v9, %v1172_v6 }
 0x372   : > { %v2066_v19 = vpop.permute.xlu2 %2065 }
 0x373   : > { %v1211_v12 = vpop.permute.xlu1 %1210 }
 0x374   : > { %v1216_v14 = vadd.f32 %v1211_v12, %v1194_v10 }
 0x376   : > { %v1228_v15 = vadd.f32 %v1221_v34, %v1216_v14 }
 0x378   : > { %v1232_v16 = vmul.f32 1.442695, %v1228_v15  ;;  %vm1230_vm9 = vcmp.gt.f32.partialorder %v1228_v15, 0.0 }
 0x37a   : > { %2834 = vpow2.f32 %v1232_v16  ;;  %v1147_v32 = vpop.permute.xlu2 %1146 }
 0x37b   : > { %v1151_v18 = vadd.f32 %v1147_v32, %v1129_v38 }
 0x380   : > { %v2835_v21 = vpop.eup %2834 }
 0x381   : > { %v2721_v29 = vadd.f32 -1.0, %v2835_v21 }
 0x382   : > { %v2042_v23 = vpop.permute.xlu0 %2041  ;;  %v1213_v43 = vpop.permute.xlu2 %1212 }
 0x383   : > { %v2054_v7 = vpop.permute.xlu1 %2053  ;;  %v2047_v24 = vadd.f32 %v2042_v23, %v2035_v26  ;;  %v1238_v30 = vmul.f32 0.1, %v2721_v29 }
 0x385   : > { %v2059_v35 = vadd.f32 %v2054_v7, %v2047_v24  ;;  %v1240_v36 = vsel %vm1230_vm9, %v1228_v15, %v1238_v30  ;;  %vm1879_vm9 = vcmask 48128  }
 0x386   : > { %v1242_v37 = vadd.f32 %v1240_v36, %v3310_v50 }
 0x387   : > { %v2071_v31 = vadd.f32 %v2066_v19, %v2059_v35 }
 0x388   : > { %1246 = vrot.lane.b32.xlu2 %v1242_v37, %s2915_s23 }
 0x389   : > { %v2073_v17 = vadd.f32 %v2071_v31, %v1221_v34 }
 0x38a   : > { %v1169_v39 = vpop.permute.xlu0 %1168  ;;  %v2056_v15 = vpop.permute.xlu2 %2055 }
 0x38b   : > { %v1173_v40 = vadd.f32 %v1169_v39, %v1151_v18  ;;  %v2077_v22 = vmul.f32 1.442695, %v2073_v17  ;;  %v1191_v41 = vpop.permute.xlu1 %1190  ;;  %vm2075_vm10 = vcmp.gt.f32.partialorder %v2073_v17, 0.0 }
 0x38d   : > { %v1195_v42 = vadd.f32 %v1191_v41, %v1173_v40  ;;  %2836 = vpow2.f32 %v2077_v22 }
 0x38f   : > { %v1217_v44 = vadd.f32 %v1213_v43, %v1195_v42 }
 0x391   : > { %v1229_v45 = vadd.f32 %v3328_v58, %v1217_v44 }
 0x392   : > { %v2032_v46 = vpop.permute.xlu0 %2031  ;;  %v3442_v30 = vpop.permute.xlu2 %1424 }
 0x393   : > { %v2837_v50 = vpop.eup %2836  ;;  %v1234_v28 = vmul.f32 1.442695, %v1229_v45  ;;  %v2036_v62 = vadd.f32 %v2032_v46, %v2024_v60  ;;  %v2044_v9 = vpop.permute.xlu1 %2043  ;;  %vm1231_vm11 = vcmp.gt.f32.partialorder %v1229_v45, 0.0 }
 0x394   : > { %v2742_v56 = vadd.f32 -1.0, %v2837_v50 }
 0x395   : > { %2838 = vpow2.f32 %v1234_v28  ;;  %v2048_v12 = vadd.f32 %v2044_v9, %v2036_v62 }
 0x396   : > { %v2083_v27 = vmul.f32 0.1, %v2742_v56 }
 0x397   : > { %v2060_v19 = vadd.f32 %v2056_v15, %v2048_v12 }
 0x398   : > { %v2085_v34 = vsel %vm2075_vm10, %v2073_v17, %v2083_v27 }
 0x399   : > { %v2087_v5 = vadd.f32 %v2085_v34, %v3319_v53 }
 0x39a   : > { %v1415_v6 = vpop.permute.xlu0 %1414 }
 0x39b   : > { %v2839_v8 = vpop.eup %2838  ;;  %2091 = vrot.lane.b32.xlu2 %v2087_v5, %s2915_s23  ;;  %v1420_v56 = vpop.permute.xlu1 %1419 }
 0x39c   : > { %v2722_v10 = vadd.f32 -1.0, %v2839_v8 }
 0x39e   : > { %v1239_v14 = vmul.f32 0.1, %v2722_v10 }
 0x3a0   : > { %v1241_v16 = vsel %vm1231_vm11, %v1229_v45, %v1239_v14 }
 0x3a1   : > { %v1243_v20 = vadd.f32 %v1241_v16, %v3314_v51  ;;  %v3444_v51 = vpop.permute.xlu2 %1463 }
 0x3a2   : > { %v2068_v25 = vpop.permute.xlu0 %2067 }
 0x3a3   : > { %v2072_v33 = vadd.f32 %v2068_v25, %v2060_v19  ;;  %1248 = vrot.lane.b32.xlu0 %v1243_v20, %s2915_s23 }
 0x3a5   : > { %v2074_v53 = vadd.f32 %v2072_v33, %v3328_v58 }
 0x3a7   : > { %v2079_v21 = vmul.f32 1.442695, %v2074_v53  ;;  %vm2076_vm12 = vcmp.gt.f32.partialorder %v2074_v53, 0.0 }
 0x3a9   : > { %2840 = vpow2.f32 %v2079_v21 }
 0x3aa   : > { %v1430_v43 = vpop.permute.xlu0 %1429 }
 0x3af   : > { %v2841_v26 = vpop.eup %2840 }
 0x3b0   : > { %v2743_v29 = vadd.f32 -1.0, %v2841_v26 }
 0x3b2   : > { %v2084_v23 = vmul.f32 0.1, %v2743_v29  ;;  %v3486_v46 = vpop.permute.xlu0 %1458 }
 0x3b4   : > { %v2086_v7 = vsel %vm2076_vm12, %v2074_v53, %v2084_v23 }
 0x3b5   : > { %v2088_v24 = vadd.f32 %v2086_v7, %v3323_v54 }
 0x3b7   : > { %2093 = vrot.lane.b32.xlu1 %v2088_v24, %s2915_s23 }
 0x3ba   : > { %v3493_v28 = vpop.permute.xlu0 %1468 }
 0x3e2   : > { %v1247_v32 = vpop.permute.xlu2 %1246 }
 0x3e3   : > { %v1252_v35 = vsel %vm917_vm0, 0.0, %v1247_v32 }
 0x3e4   : > { %v3448_v58 = vsel %vm1115_vm8, %v1252_v35, 0.0 }
 0x3e5   : > { %v1302_v36 = vmul.f32 %v3334_v63, %v3448_v58  ;;  %v1300_v37 = vmul.f32 %v3340_v2, %v3448_v58  ;;  %v1390_v54 = vmul.f32 %v3420_v55, %v3448_v58  ;;  %v1344_v38 = vmul.f32 %v3338_v1, %v3448_v58 }
 0x3e6   : > { %v1388_v31 = vmul.f32 %v3362_v13, %v3448_v58  ;;  %v1432_v18 = vmul.f32 %v1415_v6, %v3448_v58  ;;  %v1346_v39 = vmul.f32 %v3416_v49, %v3448_v58  ;;  %v1434_v40 = vmul.f32 %v3442_v30, %v3448_v58 }
 0x3e7   : > { %1312 = vrot.lane.b32.xlu2 %v1302_v36, %s2916_s24  ;;  %1308 = vrot.lane.b32.xlu0 %v1300_v37, %s2916_s24 }
 0x3e8   : > { %1400 = vrot.lane.b32.xlu1 %v1390_v54, %s2918_s10 }
 0x3ef   : > { %1352 = vrot.lane.b32.xlu2 %v1344_v38, %s2917_s9  ;;  %1396 = vrot.lane.b32.xlu0 %v1388_v31, %s2918_s10 }
 0x3f0   : > { %1440 = vrot.lane.b32.xlu1 %v1432_v18, %s2919_s13 }
 0x3f5   : > { %v2092_v17 = vpop.permute.xlu2 %2091 }
 0x3f6   : > { %v2097_v22 = vsel %vm917_vm0, 0.0, %v2092_v17 }
 0x3f7   : > { %v3473_v41 = vsel %vm1115_vm8, %v2097_v22, 0.0  ;;  %1356 = vrot.lane.b32.xlu2 %v1346_v39, %s2917_s9  ;;  %1444 = vrot.lane.b32.xlu0 %v1434_v40, %s2919_s13 }
 0x3f8   : > { %v2129_v42 = vmul.f32 %v3473_v41, %v3338_v1  ;;  %v2153_v44 = vmul.f32 %v3473_v41, %v3362_v13  ;;  %v2105_v45 = vmul.f32 %v3473_v41, %v3340_v2  ;;  %v2107_v50 = vmul.f32 %v3473_v41, %v3334_v63 }
 0x3f9   : > { %v2177_v1 = vmul.f32 %v3473_v41, %v1415_v6  ;;  %v3511_v6 = vpop.permute.xlu1 %1473  ;;  %v2179_v25 = vmul.f32 %v3473_v41, %v3442_v30  ;;  %v2155_v53 = vmul.f32 %v3473_v41, %v3420_v55  ;;  %v1276_v55 = vmul.f32 %v3330_v59, %v3448_v58 }
 0x3fa   : > { %2137 = vrot.lane.b32.xlu1 %v2129_v42, %s2917_s9  ;;  %v1278_v30 = vmul.f32 %v3412_v47, %v3448_v58  ;;  %v2101_v58 = vmul.f32 %v3473_v41, %v3330_v59 }
 0x3ff   : > { %2161 = vrot.lane.b32.xlu2 %v2153_v44, %s2918_s10  ;;  %2113 = vrot.lane.b32.xlu0 %v2105_v45, %s2916_s24 }
 0x407   : > { %2117 = vrot.lane.b32.xlu2 %v2107_v50, %s2916_s24  ;;  %2185 = vrot.lane.b32.xlu0 %v2177_v1, %s2919_s13 }
 0x415   : > { %v1249_v13 = vpop.permute.xlu0 %1248 }
 0x416   : > { %v1253_v2 = vsel %vm917_vm0, 0.0, %v1249_v13 }
 0x417   : > { %v3497_v27 = vsel %vm1115_vm8, %v1253_v2, 0.0 }
 0x418   : > { %v1391_v60 = vmul.f32 %v3418_v52, %v3497_v27  ;;  %v1303_v63 = vmul.f32 %v3344_v4, %v3497_v27  ;;  %v1301_v34 = vmul.f32 %v3414_v48, %v3497_v27  ;;  %v1433_v62 = vmul.f32 %v1420_v56, %v3497_v27 }
 0x419   : > { %v1345_v5 = vmul.f32 %v3358_v11, %v3497_v27  ;;  %v1389_v8 = vmul.f32 %v3422_v57, %v3497_v27  ;;  %v1347_v9 = vmul.f32 %v3342_v3, %v3497_v27  ;;  %v1435_v12 = vmul.f32 %v1430_v43, %v3497_v27 }
 0x41a   : > { %1402 = vrot.lane.b32.xlu2 %v1391_v60, %s2918_s10  ;;  %1314 = vrot.lane.b32.xlu0 %v1303_v63, %s2916_s24 }
 0x41b   : > { %1310 = vrot.lane.b32.xlu1 %v1301_v34, %s2916_s24 }
 0x422   : > { %1442 = vrot.lane.b32.xlu2 %v1433_v62, %s2919_s13  ;;  %1354 = vrot.lane.b32.xlu0 %v1345_v5, %s2917_s9 }
 0x423   : > { %1398 = vrot.lane.b32.xlu1 %v1389_v8, %s2918_s10 }
 0x429   : > { %v2094_v10 = vpop.permute.xlu1 %2093 }
 0x42a   : > { %v2098_v14 = vsel %vm917_vm0, 0.0, %v2094_v10  ;;  %1358 = vrot.lane.b32.xlu0 %v1347_v9, %s2917_s9 }
 0x42b   : > { %v3524_v15 = vsel %vm1115_vm8, %v2098_v14, 0.0  ;;  %1446 = vrot.lane.b32.xlu1 %v1435_v12, %s2919_s13  ;;  %vm1622_vm8 = vcmask 64512  }
 0x42c   : > { %v2130_v16 = vmul.f32 %v3524_v15, %v3358_v11  ;;  %v2154_v19 = vmul.f32 %v3524_v15, %v3422_v57  ;;  %v2106_v20 = vmul.f32 %v3524_v15, %v3414_v48  ;;  %v2131_v11 = vmul.f32 %v3473_v41, %v3416_v49 }
 0x42d   : > { %v2178_v33 = vmul.f32 %v3524_v15, %v1420_v56  ;;  %v2156_v48 = vmul.f32 %v3524_v15, %v3418_v52  ;;  %v2108_v57 = vmul.f32 %v3524_v15, %v3344_v4  ;;  %v2180_v49 = vmul.f32 %v3524_v15, %v1430_v43 }
 0x42e   : > { %2139 = vrot.lane.b32.xlu2 %v2130_v16, %s2917_s9  ;;  %v2132_v21 = vmul.f32 %v3524_v15, %v3342_v3 }
 0x432   : > { %2163 = vrot.lane.b32.xlu0 %v2154_v19, %s2918_s10 }
 0x433   : > { %2115 = vrot.lane.b32.xlu1 %v2106_v20, %s2916_s24 }
 0x436   : > { %2189 = vrot.lane.b32.xlu2 %v2179_v25, %s2919_s13 }
 0x43a   : > { %2141 = vrot.lane.b32.xlu0 %v2131_v11, %s2917_s9 }
 0x43b   : > { %2187 = vrot.lane.b32.xlu1 %v2178_v33, %s2919_s13  ;;  %v1277_v33 = vmul.f32 %v3336_v0, %v3497_v27 }
 0x43e   : > { %2167 = vrot.lane.b32.xlu2 %v2156_v48, %s2918_s10 }
 0x441   : > { %v1313_v52 = vpop.permute.xlu2 %1312 }
 0x442   : > { %2119 = vrot.lane.b32.xlu0 %v2108_v57, %s2916_s24  ;;  %v1322_v36 = vadd.f32 %v1313_v52, %v1278_v30 }
 0x443   : > { %2165 = vrot.lane.b32.xlu1 %v2155_v53, %s2918_s10 }
 0x449   : > { %v1353_v26 = vpop.permute.xlu2 %1352 }
 0x44a   : > { %2191 = vrot.lane.b32.xlu0 %v2180_v49, %s2919_s13 }
 0x44b   : > { %2143 = vrot.lane.b32.xlu1 %v2132_v21, %s2917_s9 }
 0x451   : > { %v1357_v35 = vpop.permute.xlu2 %1356 }
 0x452   : > { %v1366_v54 = vadd.f32 %v1357_v35, %v1322_v36  ;;  %v2102_v36 = vmul.f32 %v3524_v15, %v3336_v0 }
 0x459   : > { %v1309_v29 = vpop.permute.xlu0 %1308  ;;  %v2162_v60 = vpop.permute.xlu2 %2161 }
 0x45a   : > { %v1401_v4 = vpop.permute.xlu1 %1400  ;;  %v1320_v23 = vadd.f32 %v1309_v29, %v1276_v55 }
 0x45b   : > { %v1410_v31 = vadd.f32 %v1401_v4, %v1366_v54 }
 0x45c   : > { %v1364_v7 = vadd.f32 %v1353_v26, %v1320_v23  ;;  %v1279_v26 = vmul.f32 %v3332_v61, %v3497_v27 }
 0x461   : > { %v1397_v24 = vpop.permute.xlu0 %1396  ;;  %v2118_v14 = vpop.permute.xlu2 %2117 }
 0x462   : > { %v1408_v32 = vadd.f32 %v1397_v24, %v1364_v7  ;;  %v1441_v3 = vpop.permute.xlu1 %1440 }
 0x464   : > { %v1452_v37 = vadd.f32 %v1441_v3, %v1408_v32 }
 0x466   : > { %v1476_v38 = vadd.f32 %v3486_v46, %v1452_v37 }
 0x468   : > { %v1484_v18 = vmul.f32 1.442695, %v1476_v38  ;;  %vm1480_vm13 = vcmp.gt.f32.partialorder %v1476_v38, 0.0 }
 0x469   : > { %v1445_v17 = vpop.permute.xlu0 %1444 }
 0x46a   : > { %2842 = vpow2.f32 %v1484_v18  ;;  %v1454_v39 = vadd.f32 %v1445_v17, %v1410_v31 }
 0x46c   : > { %v1478_v40 = vadd.f32 %v3493_v28, %v1454_v39  ;;  %v2138_v50 = vpop.permute.xlu1 %2137 }
 0x46e   : > { %v1488_v22 = vmul.f32 1.442695, %v1478_v40  ;;  %vm1482_vm14 = vcmp.gt.f32.partialorder %v1478_v40, 0.0 }
 0x470   : > { %v2843_v42 = vpop.eup %2842  ;;  %2844 = vpow2.f32 %v1488_v22 }
 0x471   : > { %v2114_v43 = vpop.permute.xlu0 %2113  ;;  %v2723_v44 = vadd.f32 -1.0, %v2843_v42 }
 0x472   : > { %v2125_v45 = vadd.f32 %v2114_v43, %v2101_v58 }
 0x473   : > { %v1496_v1 = vmul.f32 0.1, %v2723_v44 }
 0x474   : > { %v2149_v13 = vadd.f32 %v2138_v50, %v2125_v45  ;;  %v1403_v11 = vpop.permute.xlu2 %1402  ;;  %v2103_v50 = vmul.f32 %v3473_v41, %v3412_v47 }
 0x475   : > { %v3566_v2 = vsel %vm1480_vm13, %v1476_v38, %v1496_v1 }
 0x476   : > { %v2845_v56 = vpop.eup %2844  ;;  %1508 = vrot.lane.b32.xlu2 %v3566_v2, %s2916_s24  ;;  %v2173_v34 = vadd.f32 %v2162_v60, %v2149_v13 }
 0x477   : > { %v2725_v63 = vadd.f32 -1.0, %v2845_v56  ;;  %v2127_v56 = vadd.f32 %v2118_v14, %v2103_v50 }
 0x479   : > { %v2186_v62 = vpop.permute.xlu0 %2185  ;;  %v1498_v5 = vmul.f32 0.1, %v2725_v63 }
 0x47a   : > { %v2197_v8 = vadd.f32 %v2186_v62, %v2173_v34 }
 0x47b   : > { %v3570_v59 = vsel %vm1482_vm14, %v1478_v40, %v1498_v5 }
 0x47c   : > { %v2201_v9 = vadd.f32 %v2197_v8, %v3486_v46  ;;  %1528 = vrot.lane.b32.xlu0 %v3570_v59, %s2917_s9  ;;  %1512 = vrot.lane.b32.xlu1 %v3570_v59, %s2916_s24  ;;  %v1443_v52 = vpop.permute.xlu2 %1442 }
 0x47e   : > { %v2209_v10 = vmul.f32 1.442695, %v2201_v9  ;;  %1540 = vrot.lane.b32.xlu2 %v3566_v2, %s2918_s10  ;;  %vm2205_vm15 = vcmp.gt.f32.partialorder %v2201_v9, 0.0 }
 0x480   : > { %2846 = vpow2.f32 %v2209_v10  ;;  %v2104_v10 = vmul.f32 %v3524_v15, %v3332_v61 }
 0x484   : > { %1524 = vrot.lane.b32.xlu1 %v3566_v2, %s2917_s9 }
 0x486   : > { %v2847_v12 = vpop.eup %2846 }
 0x487   : > { %v2744_v16 = vadd.f32 -1.0, %v2847_v12 }
 0x488   : > { %v2140_v17 = vpop.permute.xlu2 %2139 }
 0x489   : > { %v2221_v19 = vmul.f32 0.1, %v2744_v16 }
 0x48b   : > { %v3581_v46 = vsel %vm2205_vm15, %v2201_v9, %v2221_v19 }
 0x48c   : > { %2265 = vrot.lane.b32.xlu2 %v3581_v46, %s2918_s10  ;;  %2249 = vrot.lane.b32.xlu1 %v3581_v46, %s2917_s9  ;;  %v1315_v20 = vpop.permute.xlu0 %1314 }
 0x48d   : > { %2233 = vrot.lane.b32.xlu0 %v3581_v46, %s2916_s24  ;;  %v1311_v25 = vpop.permute.xlu1 %1310  ;;  %v1323_v4 = vadd.f32 %v1315_v20, %v1279_v26 }
 0x48e   : > { %v1321_v48 = vadd.f32 %v1311_v25, %v1277_v33 }
 0x490   : > { %v2190_v62 = vpop.permute.xlu2 %2189 }
 0x494   : > { %v1355_v57 = vpop.permute.xlu0 %1354 }
 0x495   : > { %v1399_v53 = vpop.permute.xlu1 %1398  ;;  %v1365_v49 = vadd.f32 %v1355_v57, %v1321_v48 }
 0x497   : > { %v1409_v21 = vadd.f32 %v1399_v53, %v1365_v49 }
 0x499   : > { %v1453_v29 = vadd.f32 %v1443_v52, %v1409_v21 }
 0x49b   : > { %v1477_v55 = vadd.f32 %v3444_v51, %v1453_v29 }
 0x49c   : > { %v1359_v23 = vpop.permute.xlu0 %1358 }
 0x49d   : > { %v1447_v7 = vpop.permute.xlu1 %1446  ;;  %v1367_v24 = vadd.f32 %v1359_v23, %v1323_v4  ;;  %v1486_v30 = vmul.f32 1.442695, %v1477_v55  ;;  %vm1481_vm1 = vcmp.gt.f32.partialorder %v1477_v55, 0.0  ;;  %v910_v23 = vld [vmem:[%s3964_s6] sm:$0xff] }
 0x49f   : > { %v1411_v32 = vadd.f32 %v1403_v11, %v1367_v24  ;;  %2848 = vpow2.f32 %v1486_v30  ;;  %v2168_v11 = vpop.permute.xlu2 %2167  ;;  %v883_v24 = vld [vmem:[%s3654_s20 + $0x8] sm:$0xff]  ;;  %v882_v30 = vld [vmem:[%s3654_s20] sm:$0xff] }
 0x4a1   : > { %v1455_v35 = vadd.f32 %v1447_v7, %v1411_v32  ;;  %v884_v7 = vld [vmem:[%s3654_s20 + $0x10] sm:$0xff]  ;;  %v887_v32 = vld [vmem:[%s3654_s20 + $0x28] sm:$0xff] }
 0x4a3   : > { %v1479_v3 = vadd.f32 %v3511_v6, %v1455_v35  ;;  %v886_v35 = vld [vmem:[%s3654_s20 + $0x20] sm:$0xff] }
 0x4a4   : > { %v2164_v37 = vpop.permute.xlu0 %2163 }
 0x4a5   : > { %v2849_v54 = vpop.eup %2848  ;;  %v2116_v38 = vpop.permute.xlu1 %2115  ;;  %v1490_v27 = vmul.f32 1.442695, %v1479_v3  ;;  %vm1483_vm2 = vcmp.gt.f32.partialorder %v1479_v3, 0.0 }
 0x4a6   : > { %v2126_v31 = vadd.f32 %v2116_v38, %v2102_v36  ;;  %v2724_v18 = vadd.f32 -1.0, %v2849_v54  ;;  %v892_v38 = vld [vmem:[%s3654_s20 + $0x50] sm:$0xff] }
 0x4a7   : > { %2850 = vpow2.f32 %v1490_v27 }
 0x4a8   : > { %v2150_v39 = vadd.f32 %v2140_v17, %v2126_v31  ;;  %v1497_v40 = vmul.f32 0.1, %v2724_v18  ;;  %v889_v31 = vld [vmem:[%s3654_s20 + $0x38] sm:$0xff]  ;;  %v888_v17 = vld [vmem:[%s3654_s20 + $0x30] sm:$0xff] }
 0x4aa   : > { %v3597_v22 = vsel %vm1481_vm1, %v1477_v55, %v1497_v40  ;;  %v2174_v42 = vadd.f32 %v2164_v37, %v2150_v39  ;;  %v911_v55 = vld [vmem:[%s3964_s6 + $0x8] sm:$0xf] }
 0x4ab   : > { %1510 = vrot.lane.b32.xlu0 %v3597_v22, %s2916_s24  ;;  %2727 = vmatpush.msk.msra.mxu1 %vm1569_vm6, %v911_v55 }
 0x4ac   : > { %v2142_v0 = vpop.permute.xlu0 %2141  ;;  %2748 = vmatpush.msk.msra.mxu3 %vm1569_vm6, %v911_v55 }
 0x4ad   : > { %v2851_v58 = vpop.eup %2850  ;;  %v2188_v43 = vpop.permute.xlu1 %2187  ;;  %v2151_v34 = vadd.f32 %v2142_v0, %v2127_v56  ;;  %1588 = vmatpush.msra.mxu1 %v910_v23  ;;  %v893_v56 = vld [vmem:[%s3654_s20 + $0x58] sm:$0xff] }
 0x4ae   : > { %v2198_v44 = vadd.f32 %v2188_v43, %v2174_v42  ;;  %v2726_v45 = vadd.f32 -1.0, %v2851_v58  ;;  %2308 = vmatpush.msra.mxu3 %v910_v23  ;;  %v894_v58 = vld [vmem:[%s3654_s20 + $0x60] sm:$0xff] }
 0x4b0   : > { %v2202_v1 = vadd.f32 %v2198_v44, %v3444_v51  ;;  %v1499_v13 = vmul.f32 0.1, %v2726_v45  ;;  %v890_v44 = vld [vmem:[%s3654_s20 + $0x40] sm:$0xff] }
 0x4b2   : > { %v2211_v60 = vmul.f32 1.442695, %v2202_v1  ;;  %v3604_v63 = vsel %vm1483_vm2, %v1479_v3, %v1499_v13  ;;  %vm2206_vm3 = vcmp.gt.f32.partialorder %v2202_v1, 0.0  ;;  %v885_v3 = vld [vmem:[%s3654_s20 + $0x18] sm:$0xff] }
 0x4b3   : > { %1530 = vrot.lane.b32.xlu1 %v3604_v63, %s2917_s9  ;;  %1514 = vrot.lane.b32.xlu2 %v3604_v63, %s2916_s24 }
 0x4b4   : > { %2852 = vpow2.f32 %v2211_v60  ;;  %v2120_v47 = vpop.permute.xlu0 %2119 }
 0x4b5   : > { %v2166_v5 = vpop.permute.xlu1 %2165  ;;  %v2128_v16 = vadd.f32 %v2120_v47, %v2104_v10  ;;  %v895_v47 = vld [vmem:[%s3654_s20 + $0x68] sm:$0xff]  ;;  %v902_v10 = vld [vmem:[%s3654_s20 + $0xa0] sm:$0xff] }
 0x4b6   : > { %v2175_v8 = vadd.f32 %v2166_v5, %v2151_v34  ;;  %v899_v5 = vld [vmem:[%s3654_s20 + $0x88] sm:$0xff] }
 0x4b8   : > { %v2199_v41 = vadd.f32 %v2190_v62, %v2175_v8  ;;  %v898_v8 = vld [vmem:[%s3654_s20 + $0x80] sm:$0xff] }
 0x4ba   : > { %v2853_v51 = vpop.eup %2852  ;;  %v2203_v9 = vadd.f32 %v2199_v41, %v3493_v28  ;;  %v900_v41 = vld [vmem:[%s3654_s20 + $0x90] sm:$0xff] }
 0x4bb   : > { %1526 = vrot.lane.b32.xlu2 %v3597_v22, %s2917_s9  ;;  %v2745_v12 = vadd.f32 -1.0, %v2853_v51 }
 0x4bc   : > { %v2213_v14 = vmul.f32 1.442695, %v2203_v9  ;;  %v2192_v61 = vpop.permute.xlu0 %2191  ;;  %vm2207_vm4 = vcmp.gt.f32.partialorder %v2203_v9, 0.0 }
 0x4bd   : > { %v2144_v19 = vpop.permute.xlu1 %2143  ;;  %v2222_v20 = vmul.f32 0.1, %v2745_v12 }
 0x4be   : > { %2854 = vpow2.f32 %v2213_v14  ;;  %v2152_v25 = vadd.f32 %v2144_v19, %v2128_v16 }
 0x4bf   : > { %v3615_v33 = vsel %vm2206_vm3, %v2202_v1, %v2222_v20  ;;  %v896_v1 = vld [vmem:[%s3654_s20 + $0x70] sm:$0xff] }
 0x4c0   : > { %v2176_v48 = vadd.f32 %v2168_v11, %v2152_v25  ;;  %2251 = vrot.lane.b32.xlu1 %v3615_v33, %s2917_s9  ;;  %2235 = vrot.lane.b32.xlu0 %v3615_v33, %s2916_s24 }
 0x4c2   : > { %v2200_v28 = vadd.f32 %v2192_v61, %v2176_v48 }
 0x4c3   : > { %2267 = vrot.lane.b32.xlu2 %v3615_v33, %s2918_s10 }
 0x4c4   : > { %v2855_v15 = vpop.eup %2854  ;;  %v2204_v57 = vadd.f32 %v2200_v28, %v3511_v6 }
 0x4c5   : > { %v2746_v53 = vadd.f32 -1.0, %v2855_v15 }
 0x4c6   : > { %v2215_v49 = vmul.f32 1.442695, %v2204_v57  ;;  %vm2208_vm5 = vcmp.gt.f32.partialorder %v2204_v57, 0.0 }
 0x4c7   : > { %v2223_v21 = vmul.f32 0.1, %v2746_v53 }
 0x4c8   : > { %2856 = vpow2.f32 %v2215_v49  ;;  %1542 = vrot.lane.b32.xlu1 %v3597_v22, %s2918_s10 }
 0x4c9   : > { %v3626_v52 = vsel %vm2207_vm4, %v2203_v9, %v2223_v21  ;;  %v903_v9 = vld [vmem:[%s3654_s20 + $0xa8] sm:$0xff] }
 0x4ca   : > { %2237 = vrot.lane.b32.xlu0 %v3626_v52, %s2916_s24 }
 0x4cb   : > { %2253 = vrot.lane.b32.xlu2 %v3626_v52, %s2917_s9 }
 0x4ce   : > { %v2857_v26 = vpop.eup %2856 }
 0x4cf   : > { %v2747_v29 = vadd.f32 -1.0, %v2857_v26 }
 0x4d0   : > { %v1509_v36 = vpop.permute.xlu2 %1508 }
 0x4d1   : > { %v2224_v4 = vmul.f32 0.1, %v2747_v29  ;;  %v1520_v39 = vadd.f32 %v1509_v36, %v3566_v2  ;;  %v897_v2 = vld [vmem:[%s3654_s20 + $0x78] sm:$0xff] }
 0x4d2   : > { %2269 = vrot.lane.b32.xlu0 %v3626_v52, %s2918_s10 }
 0x4d3   : > { %1544 = vrot.lane.b32.xlu2 %v3570_v59, %s2918_s10  ;;  %v3636_v6 = vsel %vm2208_vm5, %v2204_v57, %v2224_v4 }
 0x4d4   : > { %2239 = vrot.lane.b32.xlu1 %v3636_v6, %s2916_s24 }
 0x4d8   : > { %v1541_v43 = vpop.permute.xlu2 %1540 }
 0x4da   : > { %2255 = vrot.lane.b32.xlu0 %v3636_v6, %s2917_s9 }
 0x4db   : > { %1546 = vrot.lane.b32.xlu2 %v3604_v63, %s2918_s10 }
 0x4dc   : > { %2271 = vrot.lane.b32.xlu1 %v3636_v6, %s2918_s10 }
 0x4e2   : > { %1639 = vperm.xlu0 %2823, %v884_v7  }
 0x4e3   : > { %1634 = vperm.xlu2 %2825, %v883_v24  }
 0x4e4   : > { %1629 = vperm.xlu1 %2824, %v882_v30  }
 0x4e6   : > { %v2266_v34 = vpop.permute.xlu2 %2265 }
 0x4ea   : > { %1658 = vperm.xlu0 %2823, %v887_v32  }
 0x4eb   : > { %1653 = vperm.xlu2 %2825, %v886_v35  }
 0x4ec   : > { %1644 = vperm.xlu1 %2824, %v885_v3  }
 0x4ee   : > { %v1513_v37 = vpop.permute.xlu1 %1512  ;;  %v1529_v27 = vpop.permute.xlu0 %1528 }
 0x4ef   : > { %v1522_v54 = vadd.f32 %v1513_v37, %v3570_v59  ;;  %v891_v59 = vld [vmem:[%s3654_s20 + $0x48] sm:$0xff] }
 0x4f1   : > { %v3665_v18 = vadd.f32 %v1529_v27, %v1522_v54 }
 0x4f2   : > { %1707 = vperm.xlu0 %2823, %v892_v38  }
 0x4f3   : > { %1668 = vperm.xlu2 %2825, %v889_v31  }
 0x4f4   : > { %1663 = vperm.xlu1 %2824, %v888_v17  }
 0x4f6   : > { %v1525_v40 = vpop.permute.xlu1 %1524 }
 0x4f7   : > { %v1536_v42 = vadd.f32 %v1525_v40, %v1520_v39 }
 0x4f9   : > { %v1552_v0 = vadd.f32 %v1541_v43, %v1536_v42 }
 0x4fa   : > { %1741 = vperm.xlu0 %2823, %v894_v58  }
 0x4fb   : > { %2728 = vmatmul.msk.f32.vlgmr.msra.gmra.mxu1 %vm1556_vm7, %v1552_v0  ;;  %1702 = vperm.xlu2 %2825, %v891_v59  }
 0x4fc   : > { %1697 = vperm.xlu1 %2824, %v890_v44  }
 0x4fe   : > { %v2250_v13 = vpop.permute.xlu1 %2249 }
 0x4ff   : > { %v2234_v45 = vpop.permute.xlu0 %2233 }
 0x500   : > { %v2245_v50 = vadd.f32 %v2234_v45, %v3581_v46  ;;  %v901_v46 = vld [vmem:[%s3654_s20 + $0x98] sm:$0xff] }
 0x502   : > { %v2261_v60 = vadd.f32 %v2250_v13, %v2245_v50  ;;  %1756 = vperm.xlu0 %2823, %v897_v2  }
 0x503   : > { %1751 = vperm.xlu2 %2825, %v896_v1  }
 0x504   : > { %1712 = vperm.xlu1 %2824, %v893_v56   ;;  %v2277_v62 = vadd.f32 %v2266_v34, %v2261_v60 }
 0x506   : > { %2749 = vmatmul.msk.f32.vlgmr.msra.gmra.mxu3 %vm1556_vm7, %v2277_v62 }
 0x50a   : > { %1790 = vperm.xlu0 %2823, %v899_v5  }
 0x50b   : > { %1785 = vperm.xlu2 %2825, %v898_v8  }
 0x50c   : > { %1746 = vperm.xlu1 %2824, %v895_v47  }
 0x50d   : > { %v1515_v51 = vpop.permute.xlu2 %1514 }
 0x50e   : > { %v1523_v7 = vadd.f32 %v1515_v51, %v3604_v63 }
 0x512   : > { %1800 = vperm.xlu0 %2823, %v901_v46  }
 0x513   : > { %1795 = vperm.xlu2 %2825, %v900_v41  }
 0x515   : > { %v1527_v12 = vpop.permute.xlu2 %1526 }
 0x51a   : > { %1834 = vperm.xlu0 %2823, %v903_v9  }
 0x51b   : > { %1829 = vperm.xlu2 %2825, %v902_v10  }
 0x51d   : > { %v2268_v14 = vpop.permute.xlu2 %2267  ;;  %v1511_v16 = vpop.permute.xlu0 %1510 }
 0x51e   : > { %v1521_v61 = vadd.f32 %v1511_v16, %v3597_v22 }
 0x520   : > { %v1537_v57 = vadd.f32 %v1527_v12, %v1521_v61 }
 0x525   : > { %v1531_v19 = vpop.permute.xlu1 %1530  ;;  %v2254_v48 = vpop.permute.xlu2 %2253 }
 0x526   : > { %v1539_v30 = vadd.f32 %v1531_v19, %v1523_v7 }
 0x52d   : > { %v1545_v26 = vpop.permute.xlu2 %1544 }
 0x52e   : > { %v1554_v4 = vadd.f32 %v1545_v26, %v3665_v18 }
 0x532   : > { %v2252_v20 = vpop.permute.xlu1 %2251  ;;  %v2236_v25 = vpop.permute.xlu0 %2235 }
 0x533   : > { %v2246_v11 = vadd.f32 %v2236_v25, %v3615_v33 }
 0x535   : > { %v2262_v28 = vadd.f32 %v2252_v20, %v2246_v11  ;;  %v1547_v24 = vpop.permute.xlu2 %1546 }
 0x536   : > { %v1555_v32 = vadd.f32 %v1547_v24, %v1539_v30 }
 0x537   : > { %v2278_v15 = vadd.f32 %v2268_v14, %v2262_v28 }
 0x539   : > { %2750 = vmatmul.msk.f32.gmra.mxu3 %vm1556_vm7, %v2278_v15 }
 0x53a   : > { %v1543_v53 = vpop.permute.xlu1 %1542 }
 0x53b   : > { %v1553_v49 = vadd.f32 %v1543_v53, %v1537_v57 }
 0x53c   : > { %v2238_v21 = vpop.permute.xlu0 %2237 }
 0x53d   : > { %2729 = vmatmul.msk.f32.gmra.mxu1 %vm1556_vm7, %v1553_v49  ;;  %v2247_v29 = vadd.f32 %v2238_v21, %v3626_v52  ;;  %v3715_v39 = vpop.permute.xlu2 %1634 }
 0x53f   : > { %v2263_v55 = vadd.f32 %v2254_v48, %v2247_v29 }
 0x544   : > { %v2270_v33 = vpop.permute.xlu0 %2269 }
 0x545   : > { %v2279_v23 = vadd.f32 %v2270_v33, %v2263_v55  ;;  %2730 = vmatmul.msk.f32.gmra.mxu1 %vm1556_vm7, %v1554_v4  ;;  %v1654_v59 = vpop.permute.xlu2 %1653 }
 0x546   : > { %v2240_v22 = vpop.permute.xlu1 %2239 }
 0x547   : > { %2751 = vmatmul.msk.f32.gmra.mxu3 %vm1556_vm7, %v2279_v23  ;;  %v2248_v35 = vadd.f32 %v2240_v22, %v3636_v6 }
 0x54c   : > { %v2256_v3 = vpop.permute.xlu0 %2255 }
 0x54d   : > { %v2264_v36 = vadd.f32 %v2256_v3, %v2248_v35  ;;  %2731 = vmatmul.msk.f32.gmra.mxu1 %vm1556_vm7, %v1555_v32  ;;  %v3743_v2 = vpop.permute.xlu2 %1668 }
 0x54e   : > { %v2272_v52 = vpop.permute.xlu1 %2271 }
 0x54f   : > { %v2280_v37 = vadd.f32 %v2272_v52, %v2264_v36 }
 0x551   : > { %2752 = vmatmul.msk.f32.gmra.mxu3 %vm1556_vm7, %v2280_v37 }
 0x554   : > { %v3701_v63 = vpop.permute.xlu0 %1639 }
 0x555   : > { %v1703_v13 = vpop.permute.xlu2 %1702 }
 0x556   : > { %v3733_v0 = vpop.permute.xlu1 %1629 }
 0x55c   : > { %v3703_v38 = vpop.permute.xlu0 %1658 }
 0x55d   : > { %v3753_v34 = vpop.permute.xlu2 %1751 }
 0x55e   : > { %v3745_v50 = vpop.permute.xlu1 %1644 }
 0x564   : > { %v3705_v27 = vpop.permute.xlu0 %1707 }
 0x565   : > { %v1786_v9 = vpop.permute.xlu2 %1785 }
 0x566   : > { %v3749_v56 = vpop.permute.xlu1 %1663 }
 0x56c   : > { %v1742_v31 = vpop.permute.xlu0 %1741 }
 0x56d   : > { %v3769_v16 = vpop.permute.xlu2 %1795 }
 0x56e   : > { %v1698_v8 = vpop.permute.xlu1 %1697 }
 0x574   : > { %v3723_v42 = vpop.permute.xlu0 %1756 }
 0x575   : > { %v3775_v11 = vpop.permute.xlu2 %1829 }
 0x576   : > { %v3767_v12 = vpop.permute.xlu1 %1712 }
 0x578   : > { %v3697_v54 = vpop.f32.mrf.mxu1 }
 0x579   : > { %1606 = vrot.lane.b32.xlu0 %v3697_v54, %s2915_s23 }
 0x57c   : > { %v3735_v44 = vpop.permute.xlu0 %1790 }
 0x57e   : > { %v1747_v14 = vpop.permute.xlu1 %1746 }
 0x584   : > { %v3747_v1 = vpop.permute.xlu0 %1800 }
 0x589   : > { %v3711_v18 = vpop.f32.mrf.mxu3 }
 0x58c   : > { %v3751_v60 = vpop.permute.xlu0 %1834 }
 0x5ba   : > { %v3707_v6 = vpop.f32.mrf.mxu1 }
 0x5bb   : > { %1608 = vrot.lane.b32.xlu1 %v3707_v6, %s2915_s23 }
 0x5bc   : > { %v3721_v40 = vpop.f32.mrf.mxu3 }
 0x5c2   : > { %v3713_v17 = vpop.f32.mrf.mxu1 }
 0x5c3   : > { %2326 = vrot.lane.b32.xlu1 %v3711_v18, %s2915_s23  ;;  %1610 = vrot.lane.b32.xlu2 %v3713_v17, %s2915_s23 }
 0x5ca   : > { %v3725_v58 = vpop.f32.mrf.mxu1  ;;  %v3731_v43 = vpop.f32.mrf.mxu3 }
 0x5cb   : > { %1612 = vrot.lane.b32.xlu0 %v3725_v58, %s2915_s23  ;;  %2328 = vrot.lane.b32.xlu2 %v3721_v40, %s2915_s23 }
 0x5d3   : > { %2330 = vrot.lane.b32.xlu0 %v3731_v43, %s2915_s23 }
 0x5d4   : > { %v3739_v45 = vpop.f32.mrf.mxu3 }
 0x5d5   : > { %2332 = vrot.lane.b32.xlu1 %v3739_v45, %s2915_s23  ;;  %s2715_s23 = sshll.u32 %s3149_s19, 6  ;;  %s2770_s19 = sshll.u32 (%p2999_p6), %s2904_s26, 5 }
 0x5eb   : > { %v1607_v62 = vpop.permute.xlu0 %1606 }
 0x5ec   : > { %v1618_v5 = vsel %vm917_vm0, 0.0, %v1607_v62 }
 0x5ed   : > { %v3757_v47 = vsel %vm1622_vm8, %v1618_v5, 0.0 }
 0x5ee   : > { %v1759_v46 = vmul.f32 %v1742_v31, %v3757_v47  ;;  %v1715_v41 = vmul.f32 %v1698_v8, %v3757_v47  ;;  %v1671_v51 = vmul.f32 %v1654_v59, %v3757_v47  ;;  %v1803_v10 = vmul.f32 %v1786_v9, %v3757_v47 }
 0x5f0   : > { %1767 = vrot.lane.b32.xlu1 %v1759_v46, %s2918_s10  ;;  %1723 = vrot.lane.b32.xlu2 %v1715_v41, %s2917_s9 }
 0x5f1   : > { %1679 = vrot.lane.b32.xlu0 %v1671_v51, %s2916_s24 }
 0x5f8   : > { %1811 = vrot.lane.b32.xlu1 %v1803_v10, %s2919_s13 }
 0x61d   : > { %v1611_v49 = vpop.permute.xlu2 %1610 }
 0x61e   : > { %v1620_v4 = vsel %vm917_vm0, 0.0, %v1611_v49 }
 0x61f   : > { %v3797_v55 = vsel %vm1622_vm8, %v1620_v4, 0.0 }
 0x620   : > { %v1761_v22 = vmul.f32 %v3753_v34, %v3797_v55  ;;  %v1717_v24 = vmul.f32 %v3705_v27, %v3797_v55  ;;  %v1673_v30 = vmul.f32 %v3749_v56, %v3797_v55  ;;  %v1805_v32 = vmul.f32 %v3769_v16, %v3797_v55 }
 0x625   : > { %v2329_v7 = vpop.permute.xlu2 %2328 }
 0x626   : > { %v2339_v35 = vsel %vm917_vm0, 0.0, %v2329_v7 }
 0x627   : > { %v3817_v3 = vsel %vm1622_vm8, %v2339_v35, 0.0 }
 0x628   : > { %v2399_v52 = vmul.f32 %v3817_v3, %v1747_v14  ;;  %v2351_v37 = vmul.f32 %v3817_v3, %v3703_v38 }
 0x62d   : > { %v1609_v19 = vpop.permute.xlu1 %1608 }
 0x62e   : > { %v1619_v20 = vsel %vm917_vm0, 0.0, %v1609_v19  ;;  %v1647_v19 = vmul.f32 %v3733_v0, %v3757_v47 }
 0x62f   : > { %v3773_v25 = vsel %vm1622_vm8, %v1619_v20, 0.0 }
 0x630   : > { %v1672_v48 = vmul.f32 %v3703_v38, %v3773_v25  ;;  %v1760_v61 = vmul.f32 %v1747_v14, %v3773_v25  ;;  %v1716_v28 = vmul.f32 %v1703_v13, %v3773_v25  ;;  %v1804_v26 = vmul.f32 %v3735_v44, %v3773_v25 }
 0x632   : > { %1681 = vrot.lane.b32.xlu1 %v1672_v48, %s2916_s24  ;;  %1769 = vrot.lane.b32.xlu2 %v1760_v61, %s2918_s10 }
 0x633   : > { %1725 = vrot.lane.b32.xlu0 %v1716_v28, %s2917_s9 }
 0x635   : > { %v2327_v15 = vpop.permute.xlu1 %2326 }
 0x636   : > { %v2338_v57 = vsel %vm917_vm0, 0.0, %v2327_v15 }
 0x637   : > { %v3786_v53 = vsel %vm1622_vm8, %v2338_v57, 0.0 }
 0x638   : > { %v2350_v21 = vmul.f32 %v3786_v53, %v1654_v59  ;;  %v2398_v29 = vmul.f32 %v3786_v53, %v1742_v31  ;;  %v2422_v33 = vmul.f32 %v3786_v53, %v1786_v9  ;;  %v2374_v23 = vmul.f32 %v3786_v53, %v1698_v8 }
 0x639   : > { %v2375_v31 = vmul.f32 %v3817_v3, %v1703_v13  ;;  %v2423_v8 = vmul.f32 %v3817_v3, %v3735_v44 }
 0x63a   : > { %2358 = vrot.lane.b32.xlu1 %v2350_v21, %s2916_s24  ;;  %1813 = vrot.lane.b32.xlu2 %v1804_v26, %s2919_s13 }
 0x63b   : > { %2406 = vrot.lane.b32.xlu0 %v2398_v29, %s2918_s10 }
 0x63d   : > { %v1613_v36 = vpop.permute.xlu0 %1612 }
 0x63e   : > { %v1621_v59 = vsel %vm917_vm0, 0.0, %v1613_v36  ;;  %v1648_v36 = vmul.f32 %v3715_v39, %v3773_v25 }
 0x63f   : > { %v3828_v62 = vsel %vm1622_vm8, %v1621_v59, 0.0 }
 0x640   : > { %v1762_v38 = vmul.f32 %v3723_v42, %v3828_v62  ;;  %v1674_v13 = vmul.f32 %v3743_v2, %v3828_v62  ;;  %v1806_v44 = vmul.f32 %v3747_v1, %v3828_v62  ;;  %v1718_v9 = vmul.f32 %v3767_v12, %v3828_v62 }
 0x642   : > { %2430 = vrot.lane.b32.xlu1 %v2422_v33, %s2919_s13  ;;  %2382 = vrot.lane.b32.xlu2 %v2374_v23, %s2917_s9 }
 0x643   : > { %1771 = vrot.lane.b32.xlu0 %v1761_v22, %s2918_s10  ;;  %v904_v22 = vld [vmem:[%s3654_s20 + $0xb0] sm:$0xff] }
 0x645   : > { %v2331_v5 = vpop.permute.xlu0 %2330 }
 0x646   : > { %v2340_v41 = vsel %vm917_vm0, 0.0, %v2331_v5 }
 0x647   : > { %v2333_v46 = vpop.permute.xlu1 %2332  ;;  %v3841_v51 = vsel %vm1622_vm8, %v2340_v41, 0.0 }
 0x648   : > { %v2352_v10 = vmul.f32 %v3841_v51, %v3749_v56  ;;  %v2400_v15 = vmul.f32 %v3841_v51, %v3753_v34  ;;  %v2376_v56 = vmul.f32 %v3841_v51, %v3705_v27  ;;  %v2424_v49 = vmul.f32 %v3841_v51, %v3769_v16 }
 0x649   : > { %v2341_v21 = vsel %vm917_vm0, 0.0, %v2333_v46 }
 0x64a   : > { %1727 = vrot.lane.b32.xlu1 %v1717_v24, %s2917_s9  ;;  %1683 = vrot.lane.b32.xlu2 %v1673_v30, %s2916_s24  ;;  %v1724_v61 = vpop.permute.xlu2 %1723  ;;  %v3865_v34 = vsel %vm1622_vm8, %v2341_v21, 0.0 }
 0x64b   : > { %1815 = vrot.lane.b32.xlu0 %v1805_v32, %s2919_s13  ;;  %v2377_v16 = vmul.f32 %v3865_v34, %v3767_v12  ;;  %v2353_v4 = vmul.f32 %v3865_v34, %v3743_v2  ;;  %v2401_v33 = vmul.f32 %v3865_v34, %v3723_v42  ;;  %v2425_v24 = vmul.f32 %v3865_v34, %v3747_v1  ;;  %v905_v12 = vld [vmem:[%s3654_s20 + $0xb8] sm:$0xff] }
 0x652   : > { %2408 = vrot.lane.b32.xlu1 %v2399_v52, %s2918_s10  ;;  %2360 = vrot.lane.b32.xlu2 %v2351_v37, %s2916_s24 }
 0x653   : > { %2384 = vrot.lane.b32.xlu0 %v2375_v31, %s2917_s9 }
 0x65a   : > { %2432 = vrot.lane.b32.xlu2 %v2423_v8, %s2919_s13  ;;  %1773 = vrot.lane.b32.xlu1 %v1762_v38, %s2918_s10 }
 0x65b   : > { %1685 = vrot.lane.b32.xlu0 %v1674_v13, %s2916_s24 }
 0x662   : > { %v1768_v14 = vpop.permute.xlu1 %1767  ;;  %1817 = vrot.lane.b32.xlu1 %v1806_v44, %s2919_s13  ;;  %1729 = vrot.lane.b32.xlu2 %v1718_v9, %s2917_s9 }
 0x663   : > { %2362 = vrot.lane.b32.xlu0 %v2352_v10, %s2916_s24  ;;  %v1680_v20 = vpop.permute.xlu0 %1679 }
 0x664   : > { %v1691_v48 = vadd.f32 %v1680_v20, %v1647_v19 }
 0x666   : > { %v1735_v28 = vadd.f32 %v1724_v61, %v1691_v48 }
 0x668   : > { %v1779_v57 = vadd.f32 %v1768_v14, %v1735_v28 }
 0x66a   : > { %v1812_v26 = vpop.permute.xlu1 %1811  ;;  %2410 = vrot.lane.b32.xlu2 %v2400_v15, %s2918_s10  ;;  %2386 = vrot.lane.b32.xlu1 %v2376_v56, %s2917_s9 }
 0x66b   : > { %v1823_v47 = vadd.f32 %v1812_v26, %v1779_v57  ;;  %2434 = vrot.lane.b32.xlu0 %v2424_v49, %s2919_s13 }
 0x66d   : > { %v1847_v27 = vadd.f32 %v3775_v11, %v1823_v47 }
 0x66f   : > { %v1855_v29 = vmul.f32 1.442695, %v1847_v27  ;;  %vm1851_vm0 = vcmp.gt.f32.partialorder %v1847_v27, 0.0 }
 0x671   : > { %2858 = vpow2.f32 %v1855_v29  ;;  %v2347_v29 = vmul.f32 %v3817_v3, %v3715_v39 }
 0x672   : > { %2388 = vrot.lane.b32.xlu2 %v2377_v16, %s2917_s9  ;;  %2364 = vrot.lane.b32.xlu1 %v2353_v4, %s2916_s24  ;;  %s3884_s24 = scalar_lea.vmem [#allocation7], %s2715_s23 }
 0x673   : > { %2412 = vrot.lane.b32.xlu0 %v2401_v33, %s2918_s10 }
 0x677   : > { %v2859_v23 = vpop.eup %2858 }
 0x678   : > { %v2732_v7 = vadd.f32 -1.0, %v2859_v23 }
 0x67a   : > { %v1867_v30 = vmul.f32 0.1, %v2732_v7  ;;  %1839 = vperm.xlu2 %2825, %v904_v22   ;;  %2436 = vrot.lane.b32.xlu1 %v2425_v24, %s2919_s13  ;;  %s2495_s13 = scalar_lea.vmem (%p2999_p6), %s3965_s7, %s2770_s19 }
 0x67b   : > { %1844 = vperm.xlu0 %2823, %v905_v12  }
 0x67c   : > { %v1871_v42 = vsel %vm1851_vm0, %v1847_v27, %v1867_v30 }
 0x67d   : > { %v1875_v2 = vadd.f32 %v1871_v42, %v3697_v54  ;;  %v2346_v54 = vmul.f32 %v3786_v53, %v3733_v0 }
 0x67f   : > { %1880 = vst.msk [vmem:[%s3884_s24] sm:$0xff] %vm1879_vm9, %v1875_v2 }
 0x68c   : > { %v1770_v32 = vpop.permute.xlu2 %1769 }
 0x694   : > { %v1814_v35 = vpop.permute.xlu2 %1813 }
 0x69c   : > { %v2383_v1 = vpop.permute.xlu2 %2382 }
 0x6a4   : > { %v1682_v52 = vpop.permute.xlu1 %1681  ;;  %v1684_v37 = vpop.permute.xlu2 %1683 }
 0x6a5   : > { %v1692_v31 = vadd.f32 %v1682_v52, %v1648_v36  ;;  %v1726_v59 = vpop.permute.xlu0 %1725 }
 0x6a7   : > { %v1736_v5 = vadd.f32 %v1726_v59, %v1692_v31 }
 0x6a9   : > { %v1780_v8 = vadd.f32 %v1770_v32, %v1736_v5 }
 0x6ab   : > { %v1824_v38 = vadd.f32 %v1814_v35, %v1780_v8 }
 0x6ac   : > { %v2359_v13 = vpop.permute.xlu1 %2358  ;;  %v2361_v46 = vpop.permute.xlu2 %2360 }
 0x6ad   : > { %v1848_v41 = vadd.f32 %v3751_v60, %v1824_v38  ;;  %v2370_v44 = vadd.f32 %v2359_v13, %v2346_v54  ;;  %v2407_v9 = vpop.permute.xlu0 %2406  ;;  %v2371_v16 = vadd.f32 %v2361_v46, %v2347_v29 }
 0x6af   : > { %v1857_v10 = vmul.f32 1.442695, %v1848_v41  ;;  %v2394_v14 = vadd.f32 %v2383_v1, %v2370_v44  ;;  %vm1852_vm10 = vcmp.gt.f32.partialorder %v1848_v41, 0.0 }
 0x6b1   : > { %2860 = vpow2.f32 %v1857_v10  ;;  %v2418_v25 = vadd.f32 %v2407_v9, %v2394_v14 }
 0x6b4   : > { %v2431_v19 = vpop.permute.xlu1 %2430  ;;  %v2433_v20 = vpop.permute.xlu2 %2432 }
 0x6b5   : > { %v2442_v48 = vadd.f32 %v2431_v19, %v2418_v25  ;;  %v1772_v61 = vpop.permute.xlu0 %1771  ;;  %v1650_v19 = vmul.f32 %v3745_v50, %v3828_v62 }
 0x6b7   : > { %v2861_v28 = vpop.eup %2860  ;;  %v2446_v15 = vadd.f32 %v2442_v48, %v3775_v11 }
 0x6b8   : > { %v2733_v56 = vadd.f32 -1.0, %v2861_v28 }
 0x6b9   : > { %v2454_v0 = vmul.f32 1.442695, %v2446_v15  ;;  %vm2450_vm11 = vcmp.gt.f32.partialorder %v2446_v15, 0.0 }
 0x6ba   : > { %v1868_v53 = vmul.f32 0.1, %v2733_v56 }
 0x6bb   : > { %2862 = vpow2.f32 %v2454_v0 }
 0x6bc   : > { %v1872_v57 = vsel %vm1852_vm10, %v1848_v41, %v1868_v53  ;;  %v1728_v49 = vpop.permute.xlu1 %1727  ;;  %v3894_v21 = vpop.permute.xlu2 %1729 }
 0x6bd   : > { %v1876_v26 = vadd.f32 %v1872_v57, %v3707_v6  ;;  %v1816_v47 = vpop.permute.xlu0 %1815  ;;  %v1649_v6 = vmul.f32 %v3701_v63, %v3797_v55 }
 0x6bf   : > { %1881 = vst.msk [vmem:[%s3884_s24 + $0x8] sm:$0xff] %vm1879_vm9, %v1876_v26  ;;  %v1693_v42 = vadd.f32 %v1684_v37, %v1649_v6 }
 0x6c1   : > { %v2863_v27 = vpop.eup %2862  ;;  %v1737_v39 = vadd.f32 %v1728_v49, %v1693_v42 }
 0x6c2   : > { %v2753_v11 = vadd.f32 -1.0, %v2863_v27 }
 0x6c3   : > { %v1781_v52 = vadd.f32 %v1772_v61, %v1737_v39 }
 0x6c4   : > { %v2466_v4 = vmul.f32 0.1, %v2753_v11  ;;  %v2409_v33 = vpop.permute.xlu1 %2408  ;;  %v2411_v23 = vpop.permute.xlu2 %2410 }
 0x6c5   : > { %v2385_v22 = vpop.permute.xlu0 %2384  ;;  %v1825_v31 = vadd.f32 %v1816_v47, %v1781_v52 }
 0x6c6   : > { %v2470_v7 = vsel %vm2450_vm11, %v2446_v15, %v2466_v4  ;;  %v2395_v24 = vadd.f32 %v2385_v22, %v2371_v16 }
 0x6c7   : > { %v2474_v12 = vadd.f32 %v2470_v7, %v3711_v18 }
 0x6c8   : > { %v2419_v30 = vadd.f32 %v2409_v33, %v2395_v24 }
 0x6c9   : > { %2757 = vst.msk [vmem:[%s3884_s24 + $0x20] sm:$0xff] %vm1879_vm9, %v2474_v12 }
 0x6ca   : > { %v2443_v2 = vadd.f32 %v2433_v20, %v2419_v30 }
 0x6cc   : > { %v2447_v3 = vadd.f32 %v2443_v2, %v3751_v60  ;;  %v1774_v32 = vpop.permute.xlu1 %1773  ;;  %v2389_v35 = vpop.permute.xlu2 %2388  ;;  %v2348_v60 = vmul.f32 %v3841_v51, %v3701_v63 }
 0x6cd   : > { %v1686_v1 = vpop.permute.xlu0 %1685 }
 0x6ce   : > { %v2456_v36 = vmul.f32 1.442695, %v2447_v3  ;;  %vm2451_vm12 = vcmp.gt.f32.partialorder %v2447_v3, 0.0  ;;  %v1694_v61 = vadd.f32 %v1686_v1, %v1650_v19 }
 0x6d0   : > { %2864 = vpow2.f32 %v2456_v36  ;;  %v1738_v49 = vadd.f32 %v3894_v21, %v1694_v61  ;;  %v2546_v36 = vld [vmem:[%s3884_s24 + $0x20] sm:$0xff] (%p2999_p6) }
 0x6d1   : > { %2547 = vst [vmem:[%s2495_s13 + $0x40] sm:$0xff] (%p2999_p6), %v2546_v36 }
 0x6d2   : > { %v1782_v26 = vadd.f32 %v1774_v32, %v1738_v49 }
 0x6d4   : > { %v1818_v59 = vpop.permute.xlu1 %1817  ;;  %v1840_v5 = vpop.permute.xlu2 %1839 }
 0x6d5   : > { %v1849_v55 = vadd.f32 %v1840_v5, %v1825_v31  ;;  %v2363_v18 = vpop.permute.xlu0 %2362  ;;  %v1826_v27 = vadd.f32 %v1818_v59, %v1782_v26 }
 0x6d6   : > { %v2865_v8 = vpop.eup %2864  ;;  %v2372_v46 = vadd.f32 %v2363_v18, %v2348_v60 }
 0x6d7   : > { %v2754_v37 = vadd.f32 -1.0, %v2865_v8  ;;  %v1859_v38 = vmul.f32 1.442695, %v1849_v55  ;;  %vm1853_vm13 = vcmp.gt.f32.partialorder %v1849_v55, 0.0 }
 0x6d9   : > { %v2467_v54 = vmul.f32 0.1, %v2754_v37  ;;  %2866 = vpow2.f32 %v1859_v38 }
 0x6db   : > { %v2471_v13 = vsel %vm2451_vm12, %v2447_v3, %v2467_v54 }
 0x6dc   : > { %v2475_v41 = vadd.f32 %v2471_v13, %v3721_v40  ;;  %v2387_v44 = vpop.permute.xlu1 %2386  ;;  %v2349_v40 = vmul.f32 %v3865_v34, %v3745_v50 }
 0x6dd   : > { %v2396_v9 = vadd.f32 %v2387_v44, %v2372_v46  ;;  %v2435_v10 = vpop.permute.xlu0 %2434 }
 0x6de   : > { %2758 = vst.msk [vmem:[%s3884_s24 + $0x28] sm:$0xff] %vm1879_vm9, %v2475_v41 }
 0x6df   : > { %v2867_v14 = vpop.eup %2866  ;;  %v2420_v25 = vadd.f32 %v2411_v23, %v2396_v9 }
 0x6e0   : > { %v2734_v20 = vadd.f32 -1.0, %v2867_v14 }
 0x6e1   : > { %v2444_v48 = vadd.f32 %v2435_v10, %v2420_v25 }
 0x6e2   : > { %v1869_v63 = vmul.f32 0.1, %v2734_v20 }
 0x6e3   : > { %v2448_v51 = vadd.f32 %v2444_v48, %v1840_v5 }
 0x6e4   : > { %v1873_v28 = vsel %vm1853_vm13, %v1849_v55, %v1869_v63  ;;  %v2365_v15 = vpop.permute.xlu1 %2364 }
 0x6e5   : > { %v1877_v56 = vadd.f32 %v1873_v28, %v3713_v17  ;;  %v2458_v0 = vmul.f32 1.442695, %v2448_v51  ;;  %v2373_v53 = vadd.f32 %v2365_v15, %v2349_v40  ;;  %v2413_v57 = vpop.permute.xlu0 %2412  ;;  %vm2452_vm14 = vcmp.gt.f32.partialorder %v2448_v51, 0.0  ;;  %v2548_v52 = vld [vmem:[%s3884_s24 + $0x28] sm:$0xff] (%p2999_p6) }
 0x6e6   : > { %2549 = vst [vmem:[%s2495_s13 + $0x48] sm:$0xff] (%p2999_p6), %v2548_v52 }
 0x6e7   : > { %1882 = vst.msk [vmem:[%s3884_s24 + $0x10] sm:$0xff] %vm1879_vm9, %v1877_v56  ;;  %2868 = vpow2.f32 %v2458_v0  ;;  %v2397_v62 = vadd.f32 %v2389_v35, %v2373_v53 }
 0x6e9   : > { %v2421_v47 = vadd.f32 %v2413_v57, %v2397_v62 }
 0x6ec   : > { %v2437_v29 = vpop.permute.xlu1 %2436 }
 0x6ed   : > { %v2869_v11 = vpop.eup %2868  ;;  %v2445_v50 = vadd.f32 %v2437_v29, %v2421_v47  ;;  %v1845_v34 = vpop.permute.xlu0 %1844 }
 0x6ee   : > { %v2755_v16 = vadd.f32 -1.0, %v2869_v11  ;;  %v1850_v4 = vadd.f32 %v1845_v34, %v1826_v27 }
 0x6ef   : > { %v2449_v17 = vadd.f32 %v2445_v50, %v1845_v34 }
 0x6f0   : > { %v2468_v33 = vmul.f32 0.1, %v2755_v16  ;;  %v1861_v23 = vmul.f32 1.442695, %v1850_v4  ;;  %vm1854_vm15 = vcmp.gt.f32.partialorder %v1850_v4, 0.0 }
 0x6f1   : > { %v2460_v22 = vmul.f32 1.442695, %v2449_v17  ;;  %vm2453_vm1 = vcmp.gt.f32.partialorder %v2449_v17, 0.0 }
 0x6f2   : > { %v2472_v21 = vsel %vm2452_vm14, %v2448_v51, %v2468_v33  ;;  %2870 = vpow2.f32 %v1861_v23 }
 0x6f3   : > { %v2476_v7 = vadd.f32 %v2472_v21, %v3731_v43  ;;  %2872 = vpow2.f32 %v2460_v22  ;;  %v2540_v43 = vld [vmem:[%s3884_s24 + $0x8] sm:$0xff] (%p2999_p6) }
 0x6f4   : > { %2541 = vst [vmem:[%s2495_s13 + $0x8] sm:$0xff] (%p2999_p6), %v2540_v43 }
 0x6f5   : > { %2759 = vst.msk [vmem:[%s3884_s24 + $0x30] sm:$0xff] %vm1879_vm9, %v2476_v7 }
 0x6f8   : > { %v2871_v24 = vpop.eup %2870 }
 0x6f9   : > { %v2873_v6 = vpop.eup %2872  ;;  %v2735_v12 = vadd.f32 -1.0, %v2871_v24 }
 0x6fa   : > { %v2756_v30 = vadd.f32 -1.0, %v2873_v6 }
 0x6fb   : > { %v1870_v42 = vmul.f32 0.1, %v2735_v12 }
 0x6fc   : > { %v2469_v2 = vmul.f32 0.1, %v2756_v30  ;;  %v2550_v31 = vld [vmem:[%s3884_s24 + $0x30] sm:$0xff] (%p2999_p6) }
 0x6fd   : > { %v1874_v39 = vsel %vm1854_vm15, %v1850_v4, %v1870_v42  ;;  %2489 = sbr.rel (!%p2999_p6) target bundleno = 1802 (0x70a), region = 242  ;;  %2551 = vst [vmem:[%s2495_s13 + $0x50] sm:$0xff] (%p2999_p6), %v2550_v31 }
 0x6fe   : > { %v1878_v3 = vadd.f32 %v1874_v39, %v3725_v58  ;;  %v2473_v32 = vsel %vm2453_vm1, %v2449_v17, %v2469_v2  ;;  %v2538_v58 = vld [vmem:[%s3884_s24] sm:$0xff] (%p2999_p6) }
 0x6ff   : > { %v2477_v35 = vadd.f32 %v2473_v32, %v3739_v45  ;;  %v2542_v45 = vld [vmem:[%s3884_s24 + $0x10] sm:$0xff] (%p2999_p6)  ;;  %2539 = vst [vmem:[%s2495_s13] sm:$0xff] (%p2999_p6), %v2538_v58 }
 0x700   : > { %1883 = vst.msk [vmem:[%s3884_s24 + $0x18] sm:$0xff] %vm1879_vm9, %v1878_v3 }
 0x701   : > { %2760 = vst.msk [vmem:[%s3884_s24 + $0x38] sm:$0xff] %vm1879_vm9, %v2477_v35 }
 0x702   : > { %2543 = vst [vmem:[%s2495_s13 + $0x10] sm:$0xff] %v2542_v45 }
 0x707   : > { %v2544_v1 = vld [vmem:[%s3884_s24 + $0x18] sm:$0xff] }
 0x708   : > { %2545 = vst [vmem:[%s2495_s13 + $0x18] sm:$0xff] %v2544_v1  ;;  %v2552_v59 = vld [vmem:[%s3884_s24 + $0x38] sm:$0xff] }
 0x709   : > { %2553 = vst [vmem:[%s2495_s13 + $0x58] sm:$0xff] %v2552_v59 }
 0x70a PF: > { %s17_s28 = sadd.s32 1, %s2912_s28   ;;  %s3968_s24 = smov %s2900_s25 }
 0x70b   : > { %p14_p11 = scmp.ge.s32.totalorder %s17_s28, 4   ;;  %s3969_s25 = smov %s3004_s12 }
 0x70c   : > { %s3970_s26 = smov %s2908_s27  ;;  %s3971_s27 = smov %s3973_s29 }
 0x70d   :  { %16 = sbr.rel (!%p14_p11) target bundleno = 3 (0x3), region = 345 }

</bundles_post_ra>
